<compile_context>
chip_gen: v5e
topology: v5e:2x2
jax: 0.10.0
libtpu: 0.0.40
codegen_flags: <defaults>
</compile_context>

<pallas_src>
import functools

import jax
import jax.numpy as jnp
from jax import lax
from jax.experimental import pallas as pl
from jax.experimental.pallas import tpu as pltpu


def _round_up(n, m):
    return ((n + m - 1) // m) * m


def _encdec_kernel(Te, Td, Bp, H,
                   xe_ref, xd_ref, wihe_ref, whhe_ref, be_ref,
                   wihd_ref, whhd_ref, bd_ref, wfc_ref, bfc_ref, out_ref):
    """One-shot encoder/decoder LSTM + Linear.

    xe_ref  : (Te*Bp, Ie)  encoder inputs, time-major, batch-flattened (VMEM)
    xd_ref  : (Td*Bp, Id)  decoder inputs, time-major, batch-flattened (VMEM)
    wihe_ref: (Ie, 4H)  encoder W_ih^T     whhe_ref: (H, 4H)  encoder W_hh^T
    be_ref  : (1, 4H)   encoder b_ih + b_hh
    wihd_ref: (Id, 4H)  decoder W_ih^T     whhd_ref: (H, 4H)  decoder W_hh^T
    bd_ref  : (1, 4H)   decoder b_ih + b_hh
    wfc_ref : (H, Op)   fc weight^T (lane-padded)      bfc_ref: (1, Op)
    out_ref : (Td*Bp, Op)  fc(decoder hidden states), time-major, batch-flattened
    """
    f32 = jnp.float32

    # Hoisted input projections: one big MXU matmul + single bias add per LSTM,
    # instead of T tiny matmuls / bias broadcasts on the serial recurrence path.
    gxe = jnp.dot(xe_ref[...], wihe_ref[...], preferred_element_type=f32) + be_ref[...]
    gxd = jnp.dot(xd_ref[...], wihd_ref[...], preferred_element_type=f32) + bd_ref[...]

    whhe = whhe_ref[...]
    whhd = whhd_ref[...]

    def cell(gx_t, h, c, whh):
        # gates: (Bp, 4H); PyTorch gate order i, f, g, o.
        gates = gx_t + jnp.dot(h, whh, preferred_element_type=f32)
        sig = jax.nn.sigmoid(gates)          # full-tile EUP push
        tnh = jnp.tanh(gates)                # full-tile EUP push
        i_g = sig[:, 0 * H:1 * H]
        f_g = sig[:, 1 * H:2 * H]
        g_g = tnh[:, 2 * H:3 * H]
        o_g = sig[:, 3 * H:4 * H]
        c_new = f_g * c + i_g * g_g
        h_new = o_g * jnp.tanh(c_new)
        return h_new, c_new

    h = jnp.zeros((Bp, H), f32)
    c = jnp.zeros((Bp, H), f32)

    # Encoder recurrence: short fixed trip count -> static unroll, h/c in vregs.
    for t in range(Te):
        h, c = cell(gxe[t * Bp:(t + 1) * Bp, :], h, c, whhe)

    # Decoder recurrence, seeded with the encoder's final (h, c); collect every
    # hidden state so the output Linear is one lane-dense matmul at the end.
    dec_h = []
    for t in range(Td):
        h, c = cell(gxd[t * Bp:(t + 1) * Bp, :], h, c, whhd)
        dec_h.append(h)
    dec_h = jnp.concatenate(dec_h, axis=0)                     # (Td*Bp, H)

    out_ref[...] = (jnp.dot(dec_h, wfc_ref[...], preferred_element_type=f32)
                    + bfc_ref[...])


def seq2seq_lstm_encdec(enc_x, dec_x,
                        w_ih_e, w_hh_e, b_ih_e, b_hh_e,
                        w_ih_d, w_hh_d, b_ih_d, b_hh_d,
                        w_fc, b_fc):
    """Matches Seq2SeqLSTMEncDec.forward.

    enc_x: (B, Te, input_dim), dec_x: (B, Td, input_dim - 1).
    Returns (B, Td, output_dim), batch_first like the PyTorch module.
    """
    f32 = jnp.float32
    B, Te, Ie = enc_x.shape
    _, Td, Id = dec_x.shape
    H = w_hh_e.shape[1]
    O = w_fc.shape[0]

    Bp = _round_up(B, 8)          # sublane-pad the batch (padded rows dropped later)
    Iep = _round_up(Ie, 8)
    Idp = _round_up(Id, 8)
    Op = _round_up(O, 128)        # lane-dense output -> unmasked store

    def prep_x(x, T, I, Ip):
        x = jnp.pad(x.astype(f32), ((0, Bp - B), (0, 0), (0, Ip - I)))
        return jnp.transpose(x, (1, 0, 2)).reshape(T * Bp, Ip)       # time-major, flat

    def prep_wih(w, I, Ip):
        return jnp.transpose(jnp.pad(w.astype(f32), ((0, 0), (0, Ip - I))))   # (Ip, 4H)

    xe = prep_x(enc_x, Te, Ie, Iep)
    xd = prep_x(dec_x, Td, Id, Idp)
    wihe = prep_wih(w_ih_e, Ie, Iep)
    wihd = prep_wih(w_ih_d, Id, Idp)
    whhe = jnp.transpose(w_hh_e.astype(f32))                          # (H, 4H)
    whhd = jnp.transpose(w_hh_d.astype(f32))
    be = (b_ih_e + b_hh_e).reshape(1, 4 * H).astype(f32)
    bd = (b_ih_d + b_hh_d).reshape(1, 4 * H).astype(f32)
    wfc = jnp.pad(jnp.transpose(w_fc.astype(f32)), ((0, 0), (0, Op - O)))   # (H, Op)
    bfc = jnp.pad(b_fc.astype(f32).reshape(1, O), ((0, 0), (0, Op - O)))    # (1, Op)

    vmem = pl.BlockSpec(memory_space=pltpu.MemorySpace.VMEM)
    kernel = functools.partial(_encdec_kernel, Te, Td, Bp, H)
    out = pl.pallas_call(
        kernel,
        out_shape=jax.ShapeDtypeStruct((Td * Bp, Op), f32),
        in_specs=[vmem] * 10,
        out_specs=vmem,
    )(xe, xd, wihe, whhe, be, wihd, whhd, bd, wfc, bfc)

    out = out.reshape(Td, Bp, Op)[:, :B, :O]        # drop batch / lane padding
    return jnp.transpose(out, (1, 0, 2))            # (B, Td, O)


def seq2seq_lstm_encdec_ref(enc_x, dec_x,
                            w_ih_e, w_hh_e, b_ih_e, b_hh_e,
                            w_ih_d, w_hh_d, b_ih_d, b_hh_d,
                            w_fc, b_fc):
    """Pure-JAX reference (matches PyTorch nn.LSTM + nn.Linear semantics)."""
    H = w_hh_e.shape[1]
    B = enc_x.shape[0]

    def lstm(x, h, c, w_ih, w_hh, b_ih, b_hh):
        def step(carry, x_t):
            h, c = carry
            gates = x_t @ w_ih.T + b_ih + h @ w_hh.T + b_hh
            i = jax.nn.sigmoid(gates[:, 0 * H:1 * H])
            f = jax.nn.sigmoid(gates[:, 1 * H:2 * H])
            g = jnp.tanh(gates[:, 2 * H:3 * H])
            o = jax.nn.sigmoid(gates[:, 3 * H:4 * H])
            c = f * c + i * g
            h = o * jnp.tanh(c)
            return (h, c), h
        (hT, cT), hs = lax.scan(step, (h, c), jnp.transpose(x, (1, 0, 2)))
        return hs, hT, cT

    h0 = jnp.zeros((B, H), jnp.float32)
    c0 = jnp.zeros((B, H), jnp.float32)
    _, hT, cT = lstm(enc_x, h0, c0, w_ih_e, w_hh_e, b_ih_e, b_hh_e)
    dec_hs, _, _ = lstm(dec_x, hT, cT, w_ih_d, w_hh_d, b_ih_d, b_hh_d)
    out = dec_hs @ w_fc.T + b_fc                    # (Td, B, O)
    return jnp.transpose(out, (1, 0, 2))            # (B, Td, O)


if __name__ == "__main__":
    # Small shapes consistent with the module:
    # batch=4, enc_seq=8, dec_seq=6, input_dim=16 (decoder gets input_dim-1=15),
    # hidden_dim=32, output_dim=1.
    B, Te, Td = 4, 8, 6
    INPUT_SIZE, HIDDEN_SIZE, OUTPUT_DIM = 16, 32, 1
    Ie, Id, H, O = INPUT_SIZE, INPUT_SIZE - 1, HIDDEN_SIZE, OUTPUT_DIM

    key = jax.random.PRNGKey(0)
    ks = jax.random.split(key, 12)
    scale = 1.0 / jnp.sqrt(jnp.float32(H))   # PyTorch-style uniform(-1/sqrt(H), 1/sqrt(H))

    def u(k, shape):
        return jax.random.uniform(k, shape, minval=-scale, maxval=scale, dtype=jnp.float32)

    enc_x = jax.random.normal(ks[0], (B, Te, Ie), dtype=jnp.float32)
    dec_x = jax.random.normal(ks[1], (B, Td, Id), dtype=jnp.float32)
    w_ih_e = u(ks[2], (4 * H, Ie)); w_hh_e = u(ks[3], (4 * H, H))
    b_ih_e = u(ks[4], (4 * H,));    b_hh_e = u(ks[5], (4 * H,))
    w_ih_d = u(ks[6], (4 * H, Id)); w_hh_d = u(ks[7], (4 * H, H))
    b_ih_d = u(ks[8], (4 * H,));    b_hh_d = u(ks[9], (4 * H,))
    w_fc   = u(ks[10], (O, H));     b_fc   = u(ks[11], (O,))

    out = seq2seq_lstm_encdec(enc_x, dec_x,
                              w_ih_e, w_hh_e, b_ih_e, b_hh_e,
                              w_ih_d, w_hh_d, b_ih_d, b_hh_d,
                              w_fc, b_fc)
    out = jax.block_until_ready(out)

    ref = seq2seq_lstm_encdec_ref(enc_x, dec_x,
                                  w_ih_e, w_hh_e, b_ih_e, b_hh_e,
                                  w_ih_d, w_hh_d, b_ih_d, b_hh_d,
                                  w_fc, b_fc)
    assert out.shape == (B, Td, O)
    assert jnp.allclose(out, ref, atol=1e-4, rtol=1e-4), "Pallas output mismatch vs reference"

    print("KERNEL_OK")
</pallas_src>

<mosaic_0001>
module attributes {stable_mosaic.version = 11 : i64} {
  func.func @_encdec_kernel(%arg0: memref<64x16xf32, #tpu.memory_space<vmem>>, %arg1: memref<48x16xf32, #tpu.memory_space<vmem>>, %arg2: memref<16x128xf32, #tpu.memory_space<vmem>>, %arg3: memref<32x128xf32, #tpu.memory_space<vmem>>, %arg4: memref<1x128xf32, #tpu.memory_space<vmem>>, %arg5: memref<16x128xf32, #tpu.memory_space<vmem>>, %arg6: memref<32x128xf32, #tpu.memory_space<vmem>>, %arg7: memref<1x128xf32, #tpu.memory_space<vmem>>, %arg8: memref<32x128xf32, #tpu.memory_space<vmem>>, %arg9: memref<1x128xf32, #tpu.memory_space<vmem>>, %arg10: memref<48x128xf32, #tpu.memory_space<vmem>>) attributes {dimension_semantics = [], scalar_prefetch = 0 : i64, scratch_operands = 0 : i64, tpu.core_type = #tpu.core_type<tc>} {
    %c0 = arith.constant 0 : index
    %c0_0 = arith.constant 0 : index
    %0 = vector.load %arg0[%c0, %c0_0] : memref<64x16xf32, #tpu.memory_space<vmem>>, vector<64x16xf32>
    %c0_1 = arith.constant 0 : index
    %c0_2 = arith.constant 0 : index
    %1 = vector.load %arg2[%c0_1, %c0_2] : memref<16x128xf32, #tpu.memory_space<vmem>>, vector<16x128xf32>
    %cst = arith.constant dense<0.000000e+00> : vector<64x128xf32>
    %2 = tpu.matmul %0, %1, %cst {dimension_numbers = #tpu.dot_dimension_numbers<[1], [0], [0], [1], [0, 0, 1, 1], [], []>} : vector<64x16xf32>, vector<16x128xf32>, vector<64x128xf32> -> vector<64x128xf32>
    %c0_3 = arith.constant 0 : index
    %c0_4 = arith.constant 0 : index
    %3 = vector.load %arg4[%c0_3, %c0_4] : memref<1x128xf32, #tpu.memory_space<vmem>>, vector<1x128xf32>
    %4 = vector.broadcast %3 : vector<1x128xf32> to vector<64x128xf32>
    %5 = arith.addf %2, %4 : vector<64x128xf32>
    %c0_5 = arith.constant 0 : index
    %c0_6 = arith.constant 0 : index
    %6 = vector.load %arg1[%c0_5, %c0_6] : memref<48x16xf32, #tpu.memory_space<vmem>>, vector<48x16xf32>
    %c0_7 = arith.constant 0 : index
    %c0_8 = arith.constant 0 : index
    %7 = vector.load %arg5[%c0_7, %c0_8] : memref<16x128xf32, #tpu.memory_space<vmem>>, vector<16x128xf32>
    %cst_9 = arith.constant dense<0.000000e+00> : vector<48x128xf32>
    %8 = tpu.matmul %6, %7, %cst_9 {dimension_numbers = #tpu.dot_dimension_numbers<[1], [0], [0], [1], [0, 0, 1, 1], [], []>} : vector<48x16xf32>, vector<16x128xf32>, vector<48x128xf32> -> vector<48x128xf32>
    %c0_10 = arith.constant 0 : index
    %c0_11 = arith.constant 0 : index
    %9 = vector.load %arg7[%c0_10, %c0_11] : memref<1x128xf32, #tpu.memory_space<vmem>>, vector<1x128xf32>
    %10 = vector.broadcast %9 : vector<1x128xf32> to vector<48x128xf32>
    %11 = arith.addf %8, %10 : vector<48x128xf32>
    %c0_12 = arith.constant 0 : index
    %c0_13 = arith.constant 0 : index
    %12 = vector.load %arg3[%c0_12, %c0_13] : memref<32x128xf32, #tpu.memory_space<vmem>>, vector<32x128xf32>
    %c0_14 = arith.constant 0 : index
    %c0_15 = arith.constant 0 : index
    %13 = vector.load %arg6[%c0_14, %c0_15] : memref<32x128xf32, #tpu.memory_space<vmem>>, vector<32x128xf32>
    %cst_16 = arith.constant 0.000000e+00 : f32
    %14 = vector.broadcast %cst_16 : f32 to vector<8x32xf32>
    %cst_17 = arith.constant 0.000000e+00 : f32
    %15 = vector.broadcast %cst_17 : f32 to vector<8x32xf32>
    %16 = vector.extract_strided_slice %5 {offsets = [0, 0], sizes = [8, 128], strides = [1, 1]} : vector<64x128xf32> to vector<8x128xf32>
    %cst_18 = arith.constant dense<0.000000e+00> : vector<8x128xf32>
    %17 = tpu.matmul %14, %12, %cst_18 {dimension_numbers = #tpu.dot_dimension_numbers<[1], [0], [0], [1], [0, 0, 1, 1], [], []>} : vector<8x32xf32>, vector<32x128xf32>, vector<8x128xf32> -> vector<8x128xf32>
    %18 = arith.addf %16, %17 : vector<8x128xf32>
    %19 = arith.negf %18 : vector<8x128xf32>
    %20 = math.exp %19 : vector<8x128xf32>
    %cst_19 = arith.constant 1.000000e+00 : f32
    %21 = vector.broadcast %cst_19 : f32 to vector<8x128xf32>
    %22 = arith.addf %21, %20 : vector<8x128xf32>
    %23 = arith.divf %21, %22 : vector<8x128xf32>
    %24 = math.tanh %18 : vector<8x128xf32>
    %25 = vector.extract_strided_slice %23 {offsets = [0, 0], sizes = [8, 32], strides = [1, 1]} : vector<8x128xf32> to vector<8x32xf32>
    %26 = vector.extract_strided_slice %23 {offsets = [0, 32], sizes = [8, 32], strides = [1, 1]} : vector<8x128xf32> to vector<8x32xf32>
    %27 = vector.extract_strided_slice %24 {offsets = [0, 64], sizes = [8, 32], strides = [1, 1]} : vector<8x128xf32> to vector<8x32xf32>
    %28 = vector.extract_strided_slice %23 {offsets = [0, 96], sizes = [8, 32], strides = [1, 1]} : vector<8x128xf32> to vector<8x32xf32>
    %29 = arith.mulf %26, %15 : vector<8x32xf32>
    %30 = arith.mulf %25, %27 : vector<8x32xf32>
    %31 = arith.addf %29, %30 : vector<8x32xf32>
    %32 = math.tanh %31 : vector<8x32xf32>
    %33 = arith.mulf %28, %32 : vector<8x32xf32>
    %34 = vector.extract_strided_slice %5 {offsets = [8, 0], sizes = [8, 128], strides = [1, 1]} : vector<64x128xf32> to vector<8x128xf32>
    %cst_20 = arith.constant dense<0.000000e+00> : vector<8x128xf32>
    %35 = tpu.matmul %33, %12, %cst_20 {dimension_numbers = #tpu.dot_dimension_numbers<[1], [0], [0], [1], [0, 0, 1, 1], [], []>} : vector<8x32xf32>, vector<32x128xf32>, vector<8x128xf32> -> vector<8x128xf32>
    %36 = arith.addf %34, %35 : vector<8x128xf32>
    %37 = arith.negf %36 : vector<8x128xf32>
    %38 = math.exp %37 : vector<8x128xf32>
    %cst_21 = arith.constant 1.000000e+00 : f32
    %39 = vector.broadcast %cst_21 : f32 to vector<8x128xf32>
    %40 = arith.addf %39, %38 : vector<8x128xf32>
    %41 = arith.divf %39, %40 : vector<8x128xf32>
    %42 = math.tanh %36 : vector<8x128xf32>
    %43 = vector.extract_strided_slice %41 {offsets = [0, 0], sizes = [8, 32], strides = [1, 1]} : vector<8x128xf32> to vector<8x32xf32>
    %44 = vector.extract_strided_slice %41 {offsets = [0, 32], sizes = [8, 32], strides = [1, 1]} : vector<8x128xf32> to vector<8x32xf32>
    %45 = vector.extract_strided_slice %42 {offsets = [0, 64], sizes = [8, 32], strides = [1, 1]} : vector<8x128xf32> to vector<8x32xf32>
    %46 = vector.extract_strided_slice %41 {offsets = [0, 96], sizes = [8, 32], strides = [1, 1]} : vector<8x128xf32> to vector<8x32xf32>
    %47 = arith.mulf %44, %31 : vector<8x32xf32>
    %48 = arith.mulf %43, %45 : vector<8x32xf32>
    %49 = arith.addf %47, %48 : vector<8x32xf32>
    %50 = math.tanh %49 : vector<8x32xf32>
    %51 = arith.mulf %46, %50 : vector<8x32xf32>
    %52 = vector.extract_strided_slice %5 {offsets = [16, 0], sizes = [8, 128], strides = [1, 1]} : vector<64x128xf32> to vector<8x128xf32>
    %cst_22 = arith.constant dense<0.000000e+00> : vector<8x128xf32>
    %53 = tpu.matmul %51, %12, %cst_22 {dimension_numbers = #tpu.dot_dimension_numbers<[1], [0], [0], [1], [0, 0, 1, 1], [], []>} : vector<8x32xf32>, vector<32x128xf32>, vector<8x128xf32> -> vector<8x128xf32>
    %54 = arith.addf %52, %53 : vector<8x128xf32>
    %55 = arith.negf %54 : vector<8x128xf32>
    %56 = math.exp %55 : vector<8x128xf32>
    %cst_23 = arith.constant 1.000000e+00 : f32
    %57 = vector.broadcast %cst_23 : f32 to vector<8x128xf32>
    %58 = arith.addf %57, %56 : vector<8x128xf32>
    %59 = arith.divf %57, %58 : vector<8x128xf32>
    %60 = math.tanh %54 : vector<8x128xf32>
    %61 = vector.extract_strided_slice %59 {offsets = [0, 0], sizes = [8, 32], strides = [1, 1]} : vector<8x128xf32> to vector<8x32xf32>
    %62 = vector.extract_strided_slice %59 {offsets = [0, 32], sizes = [8, 32], strides = [1, 1]} : vector<8x128xf32> to vector<8x32xf32>
    %63 = vector.extract_strided_slice %60 {offsets = [0, 64], sizes = [8, 32], strides = [1, 1]} : vector<8x128xf32> to vector<8x32xf32>
    %64 = vector.extract_strided_slice %59 {offsets = [0, 96], sizes = [8, 32], strides = [1, 1]} : vector<8x128xf32> to vector<8x32xf32>
    %65 = arith.mulf %62, %49 : vector<8x32xf32>
    %66 = arith.mulf %61, %63 : vector<8x32xf32>
    %67 = arith.addf %65, %66 : vector<8x32xf32>
    %68 = math.tanh %67 : vector<8x32xf32>
    %69 = arith.mulf %64, %68 : vector<8x32xf32>
    %70 = vector.extract_strided_slice %5 {offsets = [24, 0], sizes = [8, 128], strides = [1, 1]} : vector<64x128xf32> to vector<8x128xf32>
    %cst_24 = arith.constant dense<0.000000e+00> : vector<8x128xf32>
    %71 = tpu.matmul %69, %12, %cst_24 {dimension_numbers = #tpu.dot_dimension_numbers<[1], [0], [0], [1], [0, 0, 1, 1], [], []>} : vector<8x32xf32>, vector<32x128xf32>, vector<8x128xf32> -> vector<8x128xf32>
    %72 = arith.addf %70, %71 : vector<8x128xf32>
    %73 = arith.negf %72 : vector<8x128xf32>
    %74 = math.exp %73 : vector<8x128xf32>
    %cst_25 = arith.constant 1.000000e+00 : f32
    %75 = vector.broadcast %cst_25 : f32 to vector<8x128xf32>
    %76 = arith.addf %75, %74 : vector<8x128xf32>
    %77 = arith.divf %75, %76 : vector<8x128xf32>
    %78 = math.tanh %72 : vector<8x128xf32>
    %79 = vector.extract_strided_slice %77 {offsets = [0, 0], sizes = [8, 32], strides = [1, 1]} : vector<8x128xf32> to vector<8x32xf32>
    %80 = vector.extract_strided_slice %77 {offsets = [0, 32], sizes = [8, 32], strides = [1, 1]} : vector<8x128xf32> to vector<8x32xf32>
    %81 = vector.extract_strided_slice %78 {offsets = [0, 64], sizes = [8, 32], strides = [1, 1]} : vector<8x128xf32> to vector<8x32xf32>
    %82 = vector.extract_strided_slice %77 {offsets = [0, 96], sizes = [8, 32], strides = [1, 1]} : vector<8x128xf32> to vector<8x32xf32>
    %83 = arith.mulf %80, %67 : vector<8x32xf32>
    %84 = arith.mulf %79, %81 : vector<8x32xf32>
    %85 = arith.addf %83, %84 : vector<8x32xf32>
    %86 = math.tanh %85 : vector<8x32xf32>
    %87 = arith.mulf %82, %86 : vector<8x32xf32>
    %88 = vector.extract_strided_slice %5 {offsets = [32, 0], sizes = [8, 128], strides = [1, 1]} : vector<64x128xf32> to vector<8x128xf32>
    %cst_26 = arith.constant dense<0.000000e+00> : vector<8x128xf32>
    %89 = tpu.matmul %87, %12, %cst_26 {dimension_numbers = #tpu.dot_dimension_numbers<[1], [0], [0], [1], [0, 0, 1, 1], [], []>} : vector<8x32xf32>, vector<32x128xf32>, vector<8x128xf32> -> vector<8x128xf32>
    %90 = arith.addf %88, %89 : vector<8x128xf32>
    %91 = arith.negf %90 : vector<8x128xf32>
    %92 = math.exp %91 : vector<8x128xf32>
    %cst_27 = arith.constant 1.000000e+00 : f32
    %93 = vector.broadcast %cst_27 : f32 to vector<8x128xf32>
    %94 = arith.addf %93, %92 : vector<8x128xf32>
    %95 = arith.divf %93, %94 : vector<8x128xf32>
    %96 = math.tanh %90 : vector<8x128xf32>
    %97 = vector.extract_strided_slice %95 {offsets = [0, 0], sizes = [8, 32], strides = [1, 1]} : vector<8x128xf32> to vector<8x32xf32>
    %98 = vector.extract_strided_slice %95 {offsets = [0, 32], sizes = [8, 32], strides = [1, 1]} : vector<8x128xf32> to vector<8x32xf32>
    %99 = vector.extract_strided_slice %96 {offsets = [0, 64], sizes = [8, 32], strides = [1, 1]} : vector<8x128xf32> to vector<8x32xf32>
    %100 = vector.extract_strided_slice %95 {offsets = [0, 96], sizes = [8, 32], strides = [1, 1]} : vector<8x128xf32> to vector<8x32xf32>
    %101 = arith.mulf %98, %85 : vector<8x32xf32>
    %102 = arith.mulf %97, %99 : vector<8x32xf32>
    %103 = arith.addf %101, %102 : vector<8x32xf32>
    %104 = math.tanh %103 : vector<8x32xf32>
    %105 = arith.mulf %100, %104 : vector<8x32xf32>
    %106 = vector.extract_strided_slice %5 {offsets = [40, 0], sizes = [8, 128], strides = [1, 1]} : vector<64x128xf32> to vector<8x128xf32>
    %cst_28 = arith.constant dense<0.000000e+00> : vector<8x128xf32>
    %107 = tpu.matmul %105, %12, %cst_28 {dimension_numbers = #tpu.dot_dimension_numbers<[1], [0], [0], [1], [0, 0, 1, 1], [], []>} : vector<8x32xf32>, vector<32x128xf32>, vector<8x128xf32> -> vector<8x128xf32>
    %108 = arith.addf %106, %107 : vector<8x128xf32>
    %109 = arith.negf %108 : vector<8x128xf32>
    %110 = math.exp %109 : vector<8x128xf32>
    %cst_29 = arith.constant 1.000000e+00 : f32
    %111 = vector.broadcast %cst_29 : f32 to vector<8x128xf32>
    %112 = arith.addf %111, %110 : vector<8x128xf32>
    %113 = arith.divf %111, %112 : vector<8x128xf32>
    %114 = math.tanh %108 : vector<8x128xf32>
    %115 = vector.extract_strided_slice %113 {offsets = [0, 0], sizes = [8, 32], strides = [1, 1]} : vector<8x128xf32> to vector<8x32xf32>
    %116 = vector.extract_strided_slice %113 {offsets = [0, 32], sizes = [8, 32], strides = [1, 1]} : vector<8x128xf32> to vector<8x32xf32>
    %117 = vector.extract_strided_slice %114 {offsets = [0, 64], sizes = [8, 32], strides = [1, 1]} : vector<8x128xf32> to vector<8x32xf32>
    %118 = vector.extract_strided_slice %113 {offsets = [0, 96], sizes = [8, 32], strides = [1, 1]} : vector<8x128xf32> to vector<8x32xf32>
    %119 = arith.mulf %116, %103 : vector<8x32xf32>
    %120 = arith.mulf %115, %117 : vector<8x32xf32>
    %121 = arith.addf %119, %120 : vector<8x32xf32>
    %122 = math.tanh %121 : vector<8x32xf32>
    %123 = arith.mulf %118, %122 : vector<8x32xf32>
    %124 = vector.extract_strided_slice %5 {offsets = [48, 0], sizes = [8, 128], strides = [1, 1]} : vector<64x128xf32> to vector<8x128xf32>
    %cst_30 = arith.constant dense<0.000000e+00> : vector<8x128xf32>
    %125 = tpu.matmul %123, %12, %cst_30 {dimension_numbers = #tpu.dot_dimension_numbers<[1], [0], [0], [1], [0, 0, 1, 1], [], []>} : vector<8x32xf32>, vector<32x128xf32>, vector<8x128xf32> -> vector<8x128xf32>
    %126 = arith.addf %124, %125 : vector<8x128xf32>
    %127 = arith.negf %126 : vector<8x128xf32>
    %128 = math.exp %127 : vector<8x128xf32>
    %cst_31 = arith.constant 1.000000e+00 : f32
    %129 = vector.broadcast %cst_31 : f32 to vector<8x128xf32>
    %130 = arith.addf %129, %128 : vector<8x128xf32>
    %131 = arith.divf %129, %130 : vector<8x128xf32>
    %132 = math.tanh %126 : vector<8x128xf32>
    %133 = vector.extract_strided_slice %131 {offsets = [0, 0], sizes = [8, 32], strides = [1, 1]} : vector<8x128xf32> to vector<8x32xf32>
    %134 = vector.extract_strided_slice %131 {offsets = [0, 32], sizes = [8, 32], strides = [1, 1]} : vector<8x128xf32> to vector<8x32xf32>
    %135 = vector.extract_strided_slice %132 {offsets = [0, 64], sizes = [8, 32], strides = [1, 1]} : vector<8x128xf32> to vector<8x32xf32>
    %136 = vector.extract_strided_slice %131 {offsets = [0, 96], sizes = [8, 32], strides = [1, 1]} : vector<8x128xf32> to vector<8x32xf32>
    %137 = arith.mulf %134, %121 : vector<8x32xf32>
    %138 = arith.mulf %133, %135 : vector<8x32xf32>
    %139 = arith.addf %137, %138 : vector<8x32xf32>
    %140 = math.tanh %139 : vector<8x32xf32>
    %141 = arith.mulf %136, %140 : vector<8x32xf32>
    %142 = vector.extract_strided_slice %5 {offsets = [56, 0], sizes = [8, 128], strides = [1, 1]} : vector<64x128xf32> to vector<8x128xf32>
    %cst_32 = arith.constant dense<0.000000e+00> : vector<8x128xf32>
    %143 = tpu.matmul %141, %12, %cst_32 {dimension_numbers = #tpu.dot_dimension_numbers<[1], [0], [0], [1], [0, 0, 1, 1], [], []>} : vector<8x32xf32>, vector<32x128xf32>, vector<8x128xf32> -> vector<8x128xf32>
    %144 = arith.addf %142, %143 : vector<8x128xf32>
    %145 = arith.negf %144 : vector<8x128xf32>
    %146 = math.exp %145 : vector<8x128xf32>
    %cst_33 = arith.constant 1.000000e+00 : f32
    %147 = vector.broadcast %cst_33 : f32 to vector<8x128xf32>
    %148 = arith.addf %147, %146 : vector<8x128xf32>
    %149 = arith.divf %147, %148 : vector<8x128xf32>
    %150 = math.tanh %144 : vector<8x128xf32>
    %151 = vector.extract_strided_slice %149 {offsets = [0, 0], sizes = [8, 32], strides = [1, 1]} : vector<8x128xf32> to vector<8x32xf32>
    %152 = vector.extract_strided_slice %149 {offsets = [0, 32], sizes = [8, 32], strides = [1, 1]} : vector<8x128xf32> to vector<8x32xf32>
    %153 = vector.extract_strided_slice %150 {offsets = [0, 64], sizes = [8, 32], strides = [1, 1]} : vector<8x128xf32> to vector<8x32xf32>
    %154 = vector.extract_strided_slice %149 {offsets = [0, 96], sizes = [8, 32], strides = [1, 1]} : vector<8x128xf32> to vector<8x32xf32>
    %155 = arith.mulf %152, %139 : vector<8x32xf32>
    %156 = arith.mulf %151, %153 : vector<8x32xf32>
    %157 = arith.addf %155, %156 : vector<8x32xf32>
    %158 = math.tanh %157 : vector<8x32xf32>
    %159 = arith.mulf %154, %158 : vector<8x32xf32>
    %160 = vector.extract_strided_slice %11 {offsets = [0, 0], sizes = [8, 128], strides = [1, 1]} : vector<48x128xf32> to vector<8x128xf32>
    %cst_34 = arith.constant dense<0.000000e+00> : vector<8x128xf32>
    %161 = tpu.matmul %159, %13, %cst_34 {dimension_numbers = #tpu.dot_dimension_numbers<[1], [0], [0], [1], [0, 0, 1, 1], [], []>} : vector<8x32xf32>, vector<32x128xf32>, vector<8x128xf32> -> vector<8x128xf32>
    %162 = arith.addf %160, %161 : vector<8x128xf32>
    %163 = arith.negf %162 : vector<8x128xf32>
    %164 = math.exp %163 : vector<8x128xf32>
    %cst_35 = arith.constant 1.000000e+00 : f32
    %165 = vector.broadcast %cst_35 : f32 to vector<8x128xf32>
    %166 = arith.addf %165, %164 : vector<8x128xf32>
    %167 = arith.divf %165, %166 : vector<8x128xf32>
    %168 = math.tanh %162 : vector<8x128xf32>
    %169 = vector.extract_strided_slice %167 {offsets = [0, 0], sizes = [8, 32], strides = [1, 1]} : vector<8x128xf32> to vector<8x32xf32>
    %170 = vector.extract_strided_slice %167 {offsets = [0, 32], sizes = [8, 32], strides = [1, 1]} : vector<8x128xf32> to vector<8x32xf32>
    %171 = vector.extract_strided_slice %168 {offsets = [0, 64], sizes = [8, 32], strides = [1, 1]} : vector<8x128xf32> to vector<8x32xf32>
    %172 = vector.extract_strided_slice %167 {offsets = [0, 96], sizes = [8, 32], strides = [1, 1]} : vector<8x128xf32> to vector<8x32xf32>
    %173 = arith.mulf %170, %157 : vector<8x32xf32>
    %174 = arith.mulf %169, %171 : vector<8x32xf32>
    %175 = arith.addf %173, %174 : vector<8x32xf32>
    %176 = math.tanh %175 : vector<8x32xf32>
    %177 = arith.mulf %172, %176 : vector<8x32xf32>
    %178 = vector.extract_strided_slice %11 {offsets = [8, 0], sizes = [8, 128], strides = [1, 1]} : vector<48x128xf32> to vector<8x128xf32>
    %cst_36 = arith.constant dense<0.000000e+00> : vector<8x128xf32>
    %179 = tpu.matmul %177, %13, %cst_36 {dimension_numbers = #tpu.dot_dimension_numbers<[1], [0], [0], [1], [0, 0, 1, 1], [], []>} : vector<8x32xf32>, vector<32x128xf32>, vector<8x128xf32> -> vector<8x128xf32>
    %180 = arith.addf %178, %179 : vector<8x128xf32>
    %181 = arith.negf %180 : vector<8x128xf32>
    %182 = math.exp %181 : vector<8x128xf32>
    %cst_37 = arith.constant 1.000000e+00 : f32
    %183 = vector.broadcast %cst_37 : f32 to vector<8x128xf32>
    %184 = arith.addf %183, %182 : vector<8x128xf32>
    %185 = arith.divf %183, %184 : vector<8x128xf32>
    %186 = math.tanh %180 : vector<8x128xf32>
    %187 = vector.extract_strided_slice %185 {offsets = [0, 0], sizes = [8, 32], strides = [1, 1]} : vector<8x128xf32> to vector<8x32xf32>
    %188 = vector.extract_strided_slice %185 {offsets = [0, 32], sizes = [8, 32], strides = [1, 1]} : vector<8x128xf32> to vector<8x32xf32>
    %189 = vector.extract_strided_slice %186 {offsets = [0, 64], sizes = [8, 32], strides = [1, 1]} : vector<8x128xf32> to vector<8x32xf32>
    %190 = vector.extract_strided_slice %185 {offsets = [0, 96], sizes = [8, 32], strides = [1, 1]} : vector<8x128xf32> to vector<8x32xf32>
    %191 = arith.mulf %188, %175 : vector<8x32xf32>
    %192 = arith.mulf %187, %189 : vector<8x32xf32>
    %193 = arith.addf %191, %192 : vector<8x32xf32>
    %194 = math.tanh %193 : vector<8x32xf32>
    %195 = arith.mulf %190, %194 : vector<8x32xf32>
    %196 = vector.extract_strided_slice %11 {offsets = [16, 0], sizes = [8, 128], strides = [1, 1]} : vector<48x128xf32> to vector<8x128xf32>
    %cst_38 = arith.constant dense<0.000000e+00> : vector<8x128xf32>
    %197 = tpu.matmul %195, %13, %cst_38 {dimension_numbers = #tpu.dot_dimension_numbers<[1], [0], [0], [1], [0, 0, 1, 1], [], []>} : vector<8x32xf32>, vector<32x128xf32>, vector<8x128xf32> -> vector<8x128xf32>
    %198 = arith.addf %196, %197 : vector<8x128xf32>
    %199 = arith.negf %198 : vector<8x128xf32>
    %200 = math.exp %199 : vector<8x128xf32>
    %cst_39 = arith.constant 1.000000e+00 : f32
    %201 = vector.broadcast %cst_39 : f32 to vector<8x128xf32>
    %202 = arith.addf %201, %200 : vector<8x128xf32>
    %203 = arith.divf %201, %202 : vector<8x128xf32>
    %204 = math.tanh %198 : vector<8x128xf32>
    %205 = vector.extract_strided_slice %203 {offsets = [0, 0], sizes = [8, 32], strides = [1, 1]} : vector<8x128xf32> to vector<8x32xf32>
    %206 = vector.extract_strided_slice %203 {offsets = [0, 32], sizes = [8, 32], strides = [1, 1]} : vector<8x128xf32> to vector<8x32xf32>
    %207 = vector.extract_strided_slice %204 {offsets = [0, 64], sizes = [8, 32], strides = [1, 1]} : vector<8x128xf32> to vector<8x32xf32>
    %208 = vector.extract_strided_slice %203 {offsets = [0, 96], sizes = [8, 32], strides = [1, 1]} : vector<8x128xf32> to vector<8x32xf32>
    %209 = arith.mulf %206, %193 : vector<8x32xf32>
    %210 = arith.mulf %205, %207 : vector<8x32xf32>
    %211 = arith.addf %209, %210 : vector<8x32xf32>
    %212 = math.tanh %211 : vector<8x32xf32>
    %213 = arith.mulf %208, %212 : vector<8x32xf32>
    %214 = vector.extract_strided_slice %11 {offsets = [24, 0], sizes = [8, 128], strides = [1, 1]} : vector<48x128xf32> to vector<8x128xf32>
    %cst_40 = arith.constant dense<0.000000e+00> : vector<8x128xf32>
    %215 = tpu.matmul %213, %13, %cst_40 {dimension_numbers = #tpu.dot_dimension_numbers<[1], [0], [0], [1], [0, 0, 1, 1], [], []>} : vector<8x32xf32>, vector<32x128xf32>, vector<8x128xf32> -> vector<8x128xf32>
    %216 = arith.addf %214, %215 : vector<8x128xf32>
    %217 = arith.negf %216 : vector<8x128xf32>
    %218 = math.exp %217 : vector<8x128xf32>
    %cst_41 = arith.constant 1.000000e+00 : f32
    %219 = vector.broadcast %cst_41 : f32 to vector<8x128xf32>
    %220 = arith.addf %219, %218 : vector<8x128xf32>
    %221 = arith.divf %219, %220 : vector<8x128xf32>
    %222 = math.tanh %216 : vector<8x128xf32>
    %223 = vector.extract_strided_slice %221 {offsets = [0, 0], sizes = [8, 32], strides = [1, 1]} : vector<8x128xf32> to vector<8x32xf32>
    %224 = vector.extract_strided_slice %221 {offsets = [0, 32], sizes = [8, 32], strides = [1, 1]} : vector<8x128xf32> to vector<8x32xf32>
    %225 = vector.extract_strided_slice %222 {offsets = [0, 64], sizes = [8, 32], strides = [1, 1]} : vector<8x128xf32> to vector<8x32xf32>
    %226 = vector.extract_strided_slice %221 {offsets = [0, 96], sizes = [8, 32], strides = [1, 1]} : vector<8x128xf32> to vector<8x32xf32>
    %227 = arith.mulf %224, %211 : vector<8x32xf32>
    %228 = arith.mulf %223, %225 : vector<8x32xf32>
    %229 = arith.addf %227, %228 : vector<8x32xf32>
    %230 = math.tanh %229 : vector<8x32xf32>
    %231 = arith.mulf %226, %230 : vector<8x32xf32>
    %232 = vector.extract_strided_slice %11 {offsets = [32, 0], sizes = [8, 128], strides = [1, 1]} : vector<48x128xf32> to vector<8x128xf32>
    %cst_42 = arith.constant dense<0.000000e+00> : vector<8x128xf32>
    %233 = tpu.matmul %231, %13, %cst_42 {dimension_numbers = #tpu.dot_dimension_numbers<[1], [0], [0], [1], [0, 0, 1, 1], [], []>} : vector<8x32xf32>, vector<32x128xf32>, vector<8x128xf32> -> vector<8x128xf32>
    %234 = arith.addf %232, %233 : vector<8x128xf32>
    %235 = arith.negf %234 : vector<8x128xf32>
    %236 = math.exp %235 : vector<8x128xf32>
    %cst_43 = arith.constant 1.000000e+00 : f32
    %237 = vector.broadcast %cst_43 : f32 to vector<8x128xf32>
    %238 = arith.addf %237, %236 : vector<8x128xf32>
    %239 = arith.divf %237, %238 : vector<8x128xf32>
    %240 = math.tanh %234 : vector<8x128xf32>
    %241 = vector.extract_strided_slice %239 {offsets = [0, 0], sizes = [8, 32], strides = [1, 1]} : vector<8x128xf32> to vector<8x32xf32>
    %242 = vector.extract_strided_slice %239 {offsets = [0, 32], sizes = [8, 32], strides = [1, 1]} : vector<8x128xf32> to vector<8x32xf32>
    %243 = vector.extract_strided_slice %240 {offsets = [0, 64], sizes = [8, 32], strides = [1, 1]} : vector<8x128xf32> to vector<8x32xf32>
    %244 = vector.extract_strided_slice %239 {offsets = [0, 96], sizes = [8, 32], strides = [1, 1]} : vector<8x128xf32> to vector<8x32xf32>
    %245 = arith.mulf %242, %229 : vector<8x32xf32>
    %246 = arith.mulf %241, %243 : vector<8x32xf32>
    %247 = arith.addf %245, %246 : vector<8x32xf32>
    %248 = math.tanh %247 : vector<8x32xf32>
    %249 = arith.mulf %244, %248 : vector<8x32xf32>
    %250 = vector.extract_strided_slice %11 {offsets = [40, 0], sizes = [8, 128], strides = [1, 1]} : vector<48x128xf32> to vector<8x128xf32>
    %cst_44 = arith.constant dense<0.000000e+00> : vector<8x128xf32>
    %251 = tpu.matmul %249, %13, %cst_44 {dimension_numbers = #tpu.dot_dimension_numbers<[1], [0], [0], [1], [0, 0, 1, 1], [], []>} : vector<8x32xf32>, vector<32x128xf32>, vector<8x128xf32> -> vector<8x128xf32>
    %252 = arith.addf %250, %251 : vector<8x128xf32>
    %253 = arith.negf %252 : vector<8x128xf32>
    %254 = math.exp %253 : vector<8x128xf32>
    %cst_45 = arith.constant 1.000000e+00 : f32
    %255 = vector.broadcast %cst_45 : f32 to vector<8x128xf32>
    %256 = arith.addf %255, %254 : vector<8x128xf32>
    %257 = arith.divf %255, %256 : vector<8x128xf32>
    %258 = math.tanh %252 : vector<8x128xf32>
    %259 = vector.extract_strided_slice %257 {offsets = [0, 0], sizes = [8, 32], strides = [1, 1]} : vector<8x128xf32> to vector<8x32xf32>
    %260 = vector.extract_strided_slice %257 {offsets = [0, 32], sizes = [8, 32], strides = [1, 1]} : vector<8x128xf32> to vector<8x32xf32>
    %261 = vector.extract_strided_slice %258 {offsets = [0, 64], sizes = [8, 32], strides = [1, 1]} : vector<8x128xf32> to vector<8x32xf32>
    %262 = vector.extract_strided_slice %257 {offsets = [0, 96], sizes = [8, 32], strides = [1, 1]} : vector<8x128xf32> to vector<8x32xf32>
    %263 = arith.mulf %260, %247 : vector<8x32xf32>
    %264 = arith.mulf %259, %261 : vector<8x32xf32>
    %265 = arith.addf %263, %264 : vector<8x32xf32>
    %266 = math.tanh %265 : vector<8x32xf32>
    %267 = arith.mulf %262, %266 : vector<8x32xf32>
    %268 = tpu.concatenate %177, %195, %213, %231, %249, %267 in 0 : vector<8x32xf32>, vector<8x32xf32>, vector<8x32xf32>, vector<8x32xf32>, vector<8x32xf32>, vector<8x32xf32> -> vector<48x32xf32>
    %c0_46 = arith.constant 0 : index
    %c0_47 = arith.constant 0 : index
    %269 = vector.load %arg8[%c0_46, %c0_47] : memref<32x128xf32, #tpu.memory_space<vmem>>, vector<32x128xf32>
    %cst_48 = arith.constant dense<0.000000e+00> : vector<48x128xf32>
    %270 = tpu.matmul %268, %269, %cst_48 {dimension_numbers = #tpu.dot_dimension_numbers<[1], [0], [0], [1], [0, 0, 1, 1], [], []>} : vector<48x32xf32>, vector<32x128xf32>, vector<48x128xf32> -> vector<48x128xf32>
    %c0_49 = arith.constant 0 : index
    %c0_50 = arith.constant 0 : index
    %271 = vector.load %arg9[%c0_49, %c0_50] : memref<1x128xf32, #tpu.memory_space<vmem>>, vector<1x128xf32>
    %272 = vector.broadcast %271 : vector<1x128xf32> to vector<48x128xf32>
    %273 = arith.addf %270, %272 : vector<48x128xf32>
    %c0_51 = arith.constant 0 : index
    %c0_52 = arith.constant 0 : index
    %274 = vector.load %arg10[%c0_51, %c0_52] : memref<48x128xf32, #tpu.memory_space<vmem>>, vector<48x128xf32>
    tpu.vector_store %arg10[%c0_51, %c0_52], %273 {strides = array<i32>} : memref<48x128xf32, #tpu.memory_space<vmem>>, vector<48x128xf32>,
    return
  }
}

</mosaic_0001>

<bundles_post_ra>
// kernel: tpu_custom_call.1
= control target key start
LH: loop header
LB: loop body
LE: loop exit
PB: predicated region body
PF: predicated region fallthrough
CT: control target
= control target key end

     0   :  { %vm50_vm0 = vcmask 130048   ;;  %s1694_s0 = inlined_call_operand.vmem [shape: f32[64,16], index: 0, kind: input, shape index: {}]   ;;  %s1695_s1 = inlined_call_operand.vmem [shape: f32[48,16], index: 1, kind: input, shape index: {}]   ;;  %s1696_s2 = inlined_call_operand.vmem [shape: f32[16,128], index: 2, kind: input, shape index: {}]   ;;  %s1697_s3 = inlined_call_operand.vmem [shape: f32[32,128], index: 3, kind: input, shape index: {}]   ;;  %s1698_s4 = inlined_call_operand.vmem [shape: f32[1,128], index: 4, kind: input, shape index: {}]   ;;  %s1699_s5 = inlined_call_operand.vmem [shape: f32[16,128], index: 5, kind: input, shape index: {}]   ;;  %s1700_s6 = inlined_call_operand.vmem [shape: f32[32,128], index: 6, kind: input, shape index: {}]   ;;  %s1701_s7 = inlined_call_operand.vmem [shape: f32[1,128], index: 7, kind: input, shape index: {}]   ;;  %s1702_s8 = inlined_call_operand.vmem [shape: f32[32,128], index: 8, kind: input, shape index: {}]   ;;  %s1703_s9 = inlined_call_operand.vmem [shape: f32[1,128], index: 9, kind: input, shape index: {}]   ;;  %s1704_s10 = inlined_call_operand.hbm [shape: f32[48,128], index: 10, kind: output, shape index: {}]  }
   0x1   :  { %v123_v0 = vld [vmem:[%s1699_s5 + $0x8] sm:$0xff]  ;;  %v122_v1 = vld [vmem:[%s1699_s5] sm:$0xff]  ;;  %v1415_v3 = vld [vmem:[%s1697_s3 + $0x18] sm:$0xff] }
   0x2   :  { %1189 = vmatpush.msra.mxu2 %v123_v0  ;;  %v121_v2 = vld [vmem:[%s1695_s1 + $0x28] sm:$0xff]  ;;  %160 = vmatpush.msra.mxu1 %v123_v0  ;;  %v44_v5 = vld [vmem:[%s1696_s2] sm:$0xff]  ;;  %v1427_v6 = vld [vmem:[%s1697_s3 + $0x10] sm:$0xff] }
   0x3   :  { %v45_v4 = vld [vmem:[%s1696_s2 + $0x8] sm:$0xff]  ;;  %394 = vmatpush.msra.mxu3 %v1415_v3  ;;  %v36_v7 = vld [vmem:[%s1694_s0] sm:$0xff] }
   0x4   :  { %1190 = vmatpush.msra.mxu2 %v122_v1  ;;  %89 = vmatpush.msra.mxu0 %v45_v4 }
   0x5   :  { %1155 = vmatmul.msk.f32.vlgmr.msra.gmra.mxu2 %vm50_vm0, %v121_v2  ;;  %395 = vmatpush.msra.mxu3 %v1427_v6 }
   0x6   :  { %15 = vsyncpa [#allocation3], 0  ;;  %205 = vmatpush.msrb.mxu2 %v1415_v3  ;;  %v1438_v8 = vld [vmem:[%s1697_s3 + $0x8] sm:$0xff]  ;;  %90 = vmatpush.msra.mxu0 %v44_v5  ;;  %v1446_v9 = vld [vmem:[%s1697_s3] sm:$0xff]  ;;  %v1342_v10 = vmov 0.0   ;;  %s1343_s12 = smov 64  }
   0x7   :  { %1142 = vmatmul.msk.f32.vlgmr.msra.gmra.mxu0 %vm50_vm0, %v36_v7  ;;  %396 = vmatpush.msra.mxu3 %v1438_v8  ;;  %v1472_v12 = vld [vmem:[%s1698_s4] ss:$0 sm:$0xff]  ;;  %s1344_s4 = smov 32   ;;  %v37_v37 = vld [vmem:[%s1694_s0 + $0x8] sm:$0xff]  ;;  %v38_v38 = vld [vmem:[%s1694_s0 + $0x10] sm:$0xff]  ;;  %vm189_vm5 = vcmask 261120  }
   0x8   :  { %206 = vmatpush.msrb.mxu2 %v1427_v6  ;;  %268 = vmatpush.msrb.mxu0 %v1415_v3  ;;  %v39_v39 = vld [vmem:[%s1694_s0 + $0x18] sm:$0xff]  ;;  %v40_v40 = vld [vmem:[%s1694_s0 + $0x20] sm:$0xff]  ;;  %v41_v43 = vld [vmem:[%s1694_s0 + $0x28] sm:$0xff]  ;;  %s1130_s30 = sshll.u32 %s1704_s10, 4  ;;  %s1347_s3 = smov 8   ;;  %s1131_s30 = int_to_ptr.hbm [resolvable:$true] %s1130_s30 }
   0x9   :  { %397 = vmatpush.msra.mxu3 %v1446_v9  ;;  %161 = vmatpush.msra.mxu1 %v122_v1  ;;  %v42_v44 = vld [vmem:[%s1694_s0 + $0x30] sm:$0xff]  ;;  %v43_v45 = vld [vmem:[%s1694_s0 + $0x38] sm:$0xff] }
   0xa   :  { %207 = vmatpush.msrb.mxu2 %v1438_v8  ;;  %269 = vmatpush.msrb.mxu0 %v1427_v6 }
   0xb   :  { %520 = vmatpush.msrb.mxu3 %v1415_v3 }
   0xc   :  { %208 = vmatpush.msrb.mxu2 %v1446_v9  ;;  %270 = vmatpush.msrb.mxu0 %v1438_v8 }
   0xd   :  { %209 = vmatmul.f32.vlgmr.msrb.gmra.mxu2 %v1342_v10  ;;  %521 = vmatpush.msrb.mxu3 %v1427_v6 }
   0xe   :  { %271 = vmatpush.msrb.mxu0 %v1446_v9  ;;  %331 = vmatpush.msra.mxu2 %v1415_v3 }
   0xf   :  { %522 = vmatpush.msrb.mxu3 %v1438_v8  ;;  %1143 = vmatmul.msk.f32.gmra.mxu0 %vm50_vm0, %v37_v37 }
  0x10   :  { %332 = vmatpush.msra.mxu2 %v1427_v6 }
  0x11   :  { %523 = vmatpush.msrb.mxu3 %v1446_v9 }
  0x12   :  { %333 = vmatpush.msra.mxu2 %v1438_v8 }
  0x14   :  { %334 = vmatpush.msra.mxu2 %v1446_v9 }
  0x16   :  { %457 = vmatpush.msrb.mxu2 %v1415_v3 }
  0x17   :  { %1144 = vmatmul.msk.f32.gmra.mxu0 %vm50_vm0, %v38_v38 }
  0x18   :  { %458 = vmatpush.msrb.mxu2 %v1427_v6 }
  0x1a   :  { %459 = vmatpush.msrb.mxu2 %v1438_v8 }
  0x1c   :  { %460 = vmatpush.msrb.mxu2 %v1446_v9 }
  0x1f   :  { %1145 = vmatmul.msk.f32.gmra.mxu0 %vm50_vm0, %v39_v39 }
  0x27   :  { %1146 = vmatmul.msk.f32.gmra.mxu0 %vm50_vm0, %v40_v40 }
  0x2f   :  { %1147 = vmatmul.msk.f32.gmra.mxu0 %vm50_vm0, %v41_v43 }
  0x37   :  { %1148 = vmatmul.msk.f32.gmra.mxu0 %vm50_vm0, %v42_v44 }
  0x3f   :  { %1149 = vmatmul.msk.f32.gmra.mxu0 %vm50_vm0, %v43_v45 }
  0x84   :  { %v92_v13 = vpop.f32.mrf.mxu0 }
  0x85   :  { %v93_v14 = vadd.f32 %v1472_v12, %v92_v13 }
  0x88   :  { %v1467_v11 = vpop.f32.mrf.mxu2 }
  0x8c   :  { %v95_v47 = vpop.f32.mrf.mxu0 }
  0x8d   :  { %v96_v54 = vadd.f32 %v1472_v12, %v95_v47 }
  0x90   :  { %v210_v15 = vpop.f32.mrf.mxu2 }
  0x91   :  { %v213_v16 = vadd.f32 %v210_v15, %v93_v14 }
  0x93   :  { %1204 = vtanh.f32 %v213_v16  ;;  %v1156_v18 = vmul.f32 -1.442695, %v213_v16 }
  0x94   :  { %v98_v48 = vpop.f32.mrf.mxu0 }
  0x95   :  { %1206 = vpow2.f32 %v1156_v18 }
  0x99   :  { %v1205_v17 = vpop.eup %1204 }
  0x9a   :  { %236 = vrot.lane.b32.xlu0 %v1205_v17, %s1343_s12 }
  0x9b   :  { %v1207_v19 = vpop.eup %1206 }
  0x9c   :  { %v217_v20 = vadd.f32 1.0, %v1207_v19  ;;  %v1508_v49 = vpop.f32.mrf.mxu0 }
  0x9e   :  { %1208 = vrcp.f32 %v217_v20  ;;  %v229_v26 = vand.u32 2147483648, %v217_v20  ;;  %vm223_vm2 = vweird.f32 %v217_v20  ;;  %v227_v27 = vand.u32 2147483647, %v217_v20 }
  0xa0   :  { %v230_v29 = vor.u32 1.1754944e-38, %v229_v26  ;;  %vm228_vm4 = vcmp.eq.f32.partialorder %v227_v27, 8.507059e+37 }
  0xa4   :  { %v1209_v21 = vpop.eup %1208  ;;  %v1510_v50 = vpop.f32.mrf.mxu0 }
  0xa5   :  { %v219_v22 = vmul.f32 %v1209_v21, %v217_v20  ;;  %vm224_vm1 = vweird.f32 %v1209_v21 }
  0xa6   :  { %vm225_vm3 = vmor %vm223_vm2, %vm224_vm1 }
  0xa7   :  { %v220_v23 = vsub.f32 1.0, %v219_v22  ;;  %v99_v22 = vadd.f32 %v1472_v12, %v98_v48  ;;  %v102_v48 = vadd.f32 %v1472_v12, %v1508_v49 }
  0xa9   :  { %v221_v24 = vmul.f32 %v1209_v21, %v220_v23 }
  0xab   :  { %v222_v25 = vadd.f32 %v1209_v21, %v221_v24 }
  0xac   :  { %v1512_v51 = vpop.f32.mrf.mxu0 }
  0xad   :  { %v226_v28 = vsel %vm225_vm3, %v1209_v21, %v222_v25 }
  0xae   :  { %v231_v31 = vsel %vm228_vm4, %v230_v29, %v226_v28 }
  0xaf   :  { %v234_v33 = vmul.f32 0.0, %v231_v31 }
  0xb4   :  { %v1514_v52 = vpop.f32.mrf.mxu0 }
  0xbc   :  { %v1516_v53 = vpop.f32.mrf.mxu0 }
 0x10c   :  { %v237_v30 = vpop.permute.xlu0 %236 }
 0x10d   :  { %v239_v32 = vmul.f32 %v237_v30, %v231_v31 }
 0x10f   :  { %241 = vrot.lane.b32.xlu0 %v239_v32, %s1344_s4 }
 0x181   :  { %v242_v34 = vpop.permute.xlu0 %241 }
 0x182   :  { %v244_v35 = vadd.f32 %v242_v34, %v234_v33 }
 0x184   :  { %1210 = vtanh.f32 %v244_v35 }
 0x18a   :  { %v1211_v36 = vpop.eup %1210 }
 0x18b   :  { %247 = vrot.lane.b32.xlu1 %v1211_v36, %s1343_s12 }
 0x1fd   :  { %v248_v41 = vpop.permute.xlu1 %247 }
 0x1fe   :  { %v250_v42 = vmul.f32 %v248_v41, %v231_v31 }
 0x200   :  { %252 = vrot.lane.b32.xlu1 %v250_v42, %s1344_s4 }
 0x272   :  { %v253_v46 = vpop.permute.xlu1 %252 }
 0x273   :  { %1157 = vmatmul.msk.f32.vlgmr.msrb.gmra.mxu0 %vm189_vm5, %v253_v46 }
 0x2f0   :  { %v273_v55 = vpop.f32.mrf.mxu0 }
 0x2f1   :  { %v276_v56 = vadd.f32 %v273_v55, %v96_v54 }
 0x2f3   :  { %1212 = vtanh.f32 %v276_v56  ;;  %v1158_v58 = vmul.f32 -1.442695, %v276_v56 }
 0x2f5   :  { %1214 = vpow2.f32 %v1158_v58 }
 0x2f9   :  { %v1213_v57 = vpop.eup %1212 }
 0x2fa   :  { %299 = vrot.lane.b32.xlu2 %v1213_v57, %s1343_s12 }
 0x2fb   :  { %v1215_v59 = vpop.eup %1214 }
 0x2fc   :  { %v280_v60 = vadd.f32 1.0, %v1215_v59 }
 0x2fe   :  { %1216 = vrcp.f32 %v280_v60  ;;  %v292_v2 = vand.u32 2147483648, %v280_v60  ;;  %vm286_vm7 = vweird.f32 %v280_v60  ;;  %v290_v4 = vand.u32 2147483647, %v280_v60 }
 0x300   :  { %v293_v7 = vor.u32 1.1754944e-38, %v292_v2  ;;  %vm291_vm9 = vcmp.eq.f32.partialorder %v290_v4, 8.507059e+37 }
 0x304   :  { %v1217_v61 = vpop.eup %1216 }
 0x305   :  { %v282_v62 = vmul.f32 %v1217_v61, %v280_v60  ;;  %vm287_vm6 = vweird.f32 %v1217_v61 }
 0x306   :  { %vm288_vm8 = vmor %vm286_vm7, %vm287_vm6 }
 0x307   :  { %v283_v63 = vsub.f32 1.0, %v282_v62 }
 0x309   :  { %v284_v0 = vmul.f32 %v1217_v61, %v283_v63 }
 0x30b   :  { %v285_v1 = vadd.f32 %v1217_v61, %v284_v0 }
 0x30d   :  { %v289_v5 = vsel %vm288_vm8, %v1217_v61, %v285_v1 }
 0x30e   :  { %v294_v13 = vsel %vm291_vm9, %v293_v7, %v289_v5 }
 0x30f   :  { %v297_v15 = vmul.f32 %v294_v13, %v244_v35 }
 0x354   :  { %v300_v10 = vpop.permute.xlu2 %299 }
 0x355   :  { %v302_v14 = vmul.f32 %v300_v10, %v294_v13 }
 0x357   :  { %304 = vrot.lane.b32.xlu2 %v302_v14, %s1344_s4 }
 0x3b1   :  { %v305_v16 = vpop.permute.xlu2 %304 }
 0x3b2   :  { %v307_v17 = vadd.f32 %v305_v16, %v297_v15  ;;  %v105_v16 = vadd.f32 %v1472_v12, %v1510_v50 }
 0x3b4   :  { %1218 = vtanh.f32 %v307_v17 }
 0x3ba   :  { %v1219_v18 = vpop.eup %1218 }
 0x3bb   :  { %310 = vrot.lane.b32.xlu0 %v1219_v18, %s1343_s12 }
 0x42d   :  { %v311_v19 = vpop.permute.xlu0 %310 }
 0x42e   :  { %v313_v20 = vmul.f32 %v311_v19, %v294_v13 }
 0x430   :  { %315 = vrot.lane.b32.xlu1 %v313_v20, %s1344_s4 }
 0x4a2   :  { %v316_v21 = vpop.permute.xlu1 %315 }
 0x4a3   :  { %1159 = vmatmul.msk.f32.vlgmr.msra.gmra.mxu2 %vm189_vm5, %v316_v21 }
 0x4a4   :  { %583 = vmatpush.msra.mxu2 %v1415_v3 }
 0x4a6   :  { %584 = vmatpush.msra.mxu2 %v1427_v6 }
 0x4a8   :  { %585 = vmatpush.msra.mxu2 %v1438_v8 }
 0x4aa   :  { %586 = vmatpush.msra.mxu2 %v1446_v9 }
 0x526   :  { %v336_v23 = vpop.f32.mrf.mxu2 }
 0x527   :  { %v339_v24 = vadd.f32 %v336_v23, %v99_v22 }
 0x529   :  { %1220 = vtanh.f32 %v339_v24  ;;  %v1160_v26 = vmul.f32 -1.442695, %v339_v24 }
 0x52b   :  { %1222 = vpow2.f32 %v1160_v26 }
 0x52f   :  { %v1221_v25 = vpop.eup %1220 }
 0x530   :  { %362 = vrot.lane.b32.xlu2 %v1221_v25, %s1343_s12 }
 0x531   :  { %v1223_v27 = vpop.eup %1222 }
 0x532   :  { %v343_v28 = vadd.f32 1.0, %v1223_v27 }
 0x534   :  { %1224 = vrcp.f32 %v343_v28  ;;  %v355_v34 = vand.u32 2147483648, %v343_v28  ;;  %vm349_vm11 = vweird.f32 %v343_v28  ;;  %v353_v35 = vand.u32 2147483647, %v343_v28 }
 0x536   :  { %v356_v37 = vor.u32 1.1754944e-38, %v355_v34  ;;  %vm354_vm13 = vcmp.eq.f32.partialorder %v353_v35, 8.507059e+37 }
 0x53a   :  { %v1225_v29 = vpop.eup %1224 }
 0x53b   :  { %v345_v30 = vmul.f32 %v1225_v29, %v343_v28  ;;  %vm350_vm10 = vweird.f32 %v1225_v29 }
 0x53c   :  { %vm351_vm12 = vmor %vm349_vm11, %vm350_vm10 }
 0x53d   :  { %v346_v31 = vsub.f32 1.0, %v345_v30 }
 0x53f   :  { %v347_v32 = vmul.f32 %v1225_v29, %v346_v31 }
 0x541   :  { %v348_v33 = vadd.f32 %v1225_v29, %v347_v32 }
 0x543   :  { %v352_v36 = vsel %vm351_vm12, %v1225_v29, %v348_v33 }
 0x544   :  { %v357_v39 = vsel %vm354_vm13, %v356_v37, %v352_v36 }
 0x545   :  { %v360_v41 = vmul.f32 %v357_v39, %v307_v17 }
 0x58a   :  { %v363_v38 = vpop.permute.xlu2 %362 }
 0x58b   :  { %v365_v40 = vmul.f32 %v363_v38, %v357_v39 }
 0x58d   :  { %367 = vrot.lane.b32.xlu0 %v365_v40, %s1344_s4 }
 0x5ff   :  { %v368_v42 = vpop.permute.xlu0 %367 }
 0x600   :  { %v370_v43 = vadd.f32 %v368_v42, %v360_v41  ;;  %v108_v41 = vadd.f32 %v1472_v12, %v1512_v51 }
 0x602   :  { %1226 = vtanh.f32 %v370_v43 }
 0x608   :  { %v1227_v44 = vpop.eup %1226 }
 0x609   :  { %373 = vrot.lane.b32.xlu1 %v1227_v44, %s1343_s12 }
 0x67b   :  { %v374_v45 = vpop.permute.xlu1 %373 }
 0x67c   :  { %v376_v46 = vmul.f32 %v374_v45, %v357_v39 }
 0x67e   :  { %378 = vrot.lane.b32.xlu2 %v376_v46, %s1344_s4 }
 0x6d8   :  { %v379_v47 = vpop.permute.xlu2 %378 }
 0x6d9   :  { %1161 = vmatmul.msk.f32.vlgmr.msra.gmra.mxu3 %vm189_vm5, %v379_v47 }
 0x6da   :  { %646 = vmatpush.msra.mxu3 %v1415_v3 }
 0x6dc   :  { %647 = vmatpush.msra.mxu3 %v1427_v6 }
 0x6de   :  { %648 = vmatpush.msra.mxu3 %v1438_v8 }
 0x6e0   :  { %649 = vmatpush.msra.mxu3 %v1446_v9 }
 0x75c   :  { %v399_v54 = vpop.f32.mrf.mxu3 }
 0x75d   :  { %v402_v55 = vadd.f32 %v399_v54, %v102_v48 }
 0x75f   :  { %1228 = vtanh.f32 %v402_v55  ;;  %v1162_v57 = vmul.f32 -1.442695, %v402_v55 }
 0x761   :  { %1230 = vpow2.f32 %v1162_v57 }
 0x765   :  { %v1229_v56 = vpop.eup %1228 }
 0x766   :  { %425 = vrot.lane.b32.xlu0 %v1229_v56, %s1343_s12 }
 0x767   :  { %v1231_v58 = vpop.eup %1230 }
 0x768   :  { %v406_v59 = vadd.f32 1.0, %v1231_v58 }
 0x76a   :  { %1232 = vrcp.f32 %v406_v59  ;;  %v418_v9 = vand.u32 2147483648, %v406_v59  ;;  %vm412_vm15 = vweird.f32 %v406_v59  ;;  %v416_v49 = vand.u32 2147483647, %v406_v59 }
 0x76c   :  { %v419_v63 = vor.u32 1.1754944e-38, %v418_v9  ;;  %vm417_vm2 = vcmp.eq.f32.partialorder %v416_v49, 8.507059e+37 }
 0x770   :  { %v1233_v3 = vpop.eup %1232 }
 0x771   :  { %v408_v6 = vmul.f32 %v1233_v3, %v406_v59  ;;  %vm413_vm14 = vweird.f32 %v1233_v3 }
 0x772   :  { %vm414_vm1 = vmor %vm412_vm15, %vm413_vm14 }
 0x773   :  { %v409_v60 = vsub.f32 1.0, %v408_v6 }
 0x775   :  { %v410_v8 = vmul.f32 %v1233_v3, %v409_v60 }
 0x777   :  { %v411_v61 = vadd.f32 %v1233_v3, %v410_v8 }
 0x779   :  { %v415_v62 = vsel %vm414_vm1, %v1233_v3, %v411_v61 }
 0x77a   :  { %v420_v1 = vsel %vm417_vm2, %v419_v63, %v415_v62 }
 0x77b   :  { %v423_v4 = vmul.f32 %v420_v1, %v370_v43 }
 0x7d8   :  { %v426_v0 = vpop.permute.xlu0 %425 }
 0x7d9   :  { %v428_v2 = vmul.f32 %v426_v0, %v420_v1 }
 0x7db   :  { %430 = vrot.lane.b32.xlu1 %v428_v2, %s1344_s4  ;;  %v111_v2 = vadd.f32 %v1472_v12, %v1514_v52 }
 0x84d   :  { %v431_v5 = vpop.permute.xlu1 %430 }
 0x84e   :  { %v433_v7 = vadd.f32 %v431_v5, %v423_v4 }
 0x850   :  { %1234 = vtanh.f32 %v433_v7 }
 0x856   :  { %v1235_v10 = vpop.eup %1234 }
 0x857   :  { %436 = vrot.lane.b32.xlu2 %v1235_v10, %s1343_s12 }
 0x8b1   :  { %v437_v13 = vpop.permute.xlu2 %436 }
 0x8b2   :  { %v439_v14 = vmul.f32 %v437_v13, %v420_v1 }
 0x8b4   :  { %441 = vrot.lane.b32.xlu0 %v439_v14, %s1344_s4 }
 0x926   :  { %v442_v15 = vpop.permute.xlu0 %441 }
 0x927   :  { %1163 = vmatmul.msk.f32.vlgmr.msrb.gmra.mxu2 %vm189_vm5, %v442_v15 }
 0x9aa   :  { %v462_v17 = vpop.f32.mrf.mxu2 }
 0x9ab   :  { %v465_v18 = vadd.f32 %v462_v17, %v105_v16 }
 0x9ad   :  { %1236 = vtanh.f32 %v465_v18  ;;  %v1164_v20 = vmul.f32 -1.442695, %v465_v18 }
 0x9af   :  { %1238 = vpow2.f32 %v1164_v20 }
 0x9b3   :  { %v1237_v19 = vpop.eup %1236 }
 0x9b4   :  { %488 = vrot.lane.b32.xlu1 %v1237_v19, %s1343_s12 }
 0x9b5   :  { %v1239_v21 = vpop.eup %1238 }
 0x9b6   :  { %v469_v22 = vadd.f32 1.0, %v1239_v21 }
 0x9b8   :  { %1240 = vrcp.f32 %v469_v22  ;;  %v481_v28 = vand.u32 2147483648, %v469_v22  ;;  %vm475_vm4 = vweird.f32 %v469_v22  ;;  %v479_v50 = vand.u32 2147483647, %v469_v22 }
 0x9ba   :  { %v482_v30 = vor.u32 1.1754944e-38, %v481_v28  ;;  %vm480_vm7 = vcmp.eq.f32.partialorder %v479_v50, 8.507059e+37 }
 0x9be   :  { %v1241_v23 = vpop.eup %1240 }
 0x9bf   :  { %v471_v24 = vmul.f32 %v1241_v23, %v469_v22  ;;  %vm476_vm3 = vweird.f32 %v1241_v23 }
 0x9c0   :  { %vm477_vm6 = vmor %vm475_vm4, %vm476_vm3 }
 0x9c1   :  { %v472_v25 = vsub.f32 1.0, %v471_v24 }
 0x9c3   :  { %v473_v26 = vmul.f32 %v1241_v23, %v472_v25 }
 0x9c5   :  { %v474_v27 = vadd.f32 %v1241_v23, %v473_v26 }
 0x9c7   :  { %v478_v29 = vsel %vm477_vm6, %v1241_v23, %v474_v27 }
 0x9c8   :  { %v483_v32 = vsel %vm480_vm7, %v482_v30, %v478_v29 }
 0x9c9   :  { %v486_v34 = vmul.f32 %v483_v32, %v433_v7 }
 0xa26   :  { %v489_v31 = vpop.permute.xlu1 %488 }
 0xa27   :  { %v491_v33 = vmul.f32 %v489_v31, %v483_v32 }
 0xa29   :  { %493 = vrot.lane.b32.xlu2 %v491_v33, %s1344_s4 }
 0xa83   :  { %v494_v35 = vpop.permute.xlu2 %493 }
 0xa84   :  { %v496_v36 = vadd.f32 %v494_v35, %v486_v34 }
 0xa86   :  { %1242 = vtanh.f32 %v496_v36 }
 0xa8c   :  { %v1243_v37 = vpop.eup %1242 }
 0xa8d   :  { %499 = vrot.lane.b32.xlu0 %v1243_v37, %s1343_s12 }
 0xaff   :  { %v500_v38 = vpop.permute.xlu0 %499 }
 0xb00   :  { %v502_v39 = vmul.f32 %v500_v38, %v483_v32  ;;  %v114_v32 = vadd.f32 %v1472_v12, %v1516_v53 }
 0xb02   :  { %504 = vrot.lane.b32.xlu1 %v502_v39, %s1344_s4 }
 0xb74   :  { %v505_v40 = vpop.permute.xlu1 %504 }
 0xb75   :  { %1165 = vmatmul.msk.f32.vlgmr.msrb.gmra.mxu3 %vm189_vm5, %v505_v40 }
 0xbf8   :  { %v525_v42 = vpop.f32.mrf.mxu3 }
 0xbf9   :  { %v528_v43 = vadd.f32 %v525_v42, %v108_v41 }
 0xbfb   :  { %1244 = vtanh.f32 %v528_v43  ;;  %v1166_v45 = vmul.f32 -1.442695, %v528_v43 }
 0xbfd   :  { %1246 = vpow2.f32 %v1166_v45 }
 0xc01   :  { %v1245_v44 = vpop.eup %1244 }
 0xc02   :  { %551 = vrot.lane.b32.xlu2 %v1245_v44, %s1343_s12 }
 0xc03   :  { %v1247_v46 = vpop.eup %1246 }
 0xc04   :  { %v532_v47 = vadd.f32 1.0, %v1247_v46 }
 0xc06   :  { %1248 = vrcp.f32 %v532_v47  ;;  %v544_v58 = vand.u32 2147483648, %v532_v47  ;;  %vm538_vm9 = vweird.f32 %v532_v47  ;;  %v542_v51 = vand.u32 2147483647, %v532_v47 }
 0xc08   :  { %v545_v3 = vor.u32 1.1754944e-38, %v544_v58  ;;  %vm543_vm11 = vcmp.eq.f32.partialorder %v542_v51, 8.507059e+37  ;;  %v188_v58 = vld [vmem:[%s1700_s6 + $0x18] sm:$0xff]  ;;  %v187_v51 = vld [vmem:[%s1700_s6 + $0x10] sm:$0xff] }
 0xc09   :  { %709 = vmatpush.msrb.mxu2 %v188_v58  ;;  %772 = vmatpush.msrb.mxu3 %v188_v58 }
 0xc0a   :  { %961 = vmatpush.msrb.mxu1 %v188_v58 }
 0xc0b   :  { %710 = vmatpush.msrb.mxu2 %v187_v51  ;;  %773 = vmatpush.msrb.mxu3 %v187_v51 }
 0xc0c   :  { %v1249_v48 = vpop.eup %1248  ;;  %962 = vmatpush.msrb.mxu1 %v187_v51 }
 0xc0d   :  { %v534_v54 = vmul.f32 %v1249_v48, %v532_v47  ;;  %vm539_vm8 = vweird.f32 %v1249_v48 }
 0xc0e   :  { %vm540_vm10 = vmor %vm538_vm9, %vm539_vm8 }
 0xc0f   :  { %v535_v55 = vsub.f32 1.0, %v534_v54 }
 0xc11   :  { %v536_v56 = vmul.f32 %v1249_v48, %v535_v55 }
 0xc13   :  { %v537_v57 = vadd.f32 %v1249_v48, %v536_v56 }
 0xc15   :  { %v541_v59 = vsel %vm540_vm10, %v1249_v48, %v537_v57 }
 0xc16   :  { %v546_v60 = vsel %vm543_vm11, %v545_v3, %v541_v59  ;;  %v186_v59 = vld [vmem:[%s1700_s6 + $0x8] sm:$0xff]  ;;  %v185_v3 = vld [vmem:[%s1700_s6] sm:$0xff] }
 0xc17   :  { %v549_v61 = vmul.f32 %v546_v60, %v496_v36  ;;  %711 = vmatpush.msrb.mxu2 %v186_v59  ;;  %774 = vmatpush.msrb.mxu3 %v186_v59 }
 0xc18   :  { %963 = vmatpush.msrb.mxu1 %v186_v59 }
 0xc19   :  { %712 = vmatpush.msrb.mxu2 %v185_v3  ;;  %775 = vmatpush.msrb.mxu3 %v185_v3 }
 0xc1a   :  { %964 = vmatpush.msrb.mxu1 %v185_v3 }
 0xc5c   :  { %v552_v6 = vpop.permute.xlu2 %551 }
 0xc5d   :  { %v554_v8 = vmul.f32 %v552_v6, %v546_v60 }
 0xc5f   :  { %556 = vrot.lane.b32.xlu0 %v554_v8, %s1344_s4  ;;  %v116_v8 = vld [vmem:[%s1695_s1] sm:$0xff] }
 0xc60   :  { %1150 = vmatmul.msk.f32.vlgmr.msra.gmra.mxu1 %vm50_vm0, %v116_v8 }
 0xcd1   :  { %v557_v9 = vpop.permute.xlu0 %556 }
 0xcd2   :  { %v559_v49 = vadd.f32 %v557_v9, %v549_v61 }
 0xcd4   :  { %1250 = vtanh.f32 %v559_v49 }
 0xcda   :  { %v1251_v62 = vpop.eup %1250 }
 0xcdb   :  { %562 = vrot.lane.b32.xlu1 %v1251_v62, %s1343_s12 }
 0xcdd   :  { %v163_v9 = vpop.f32.mrf.mxu1 }
 0xd4d   :  { %v563_v63 = vpop.permute.xlu1 %562 }
 0xd4e   :  { %v565_v0 = vmul.f32 %v563_v63, %v546_v60 }
 0xd50   :  { %567 = vrot.lane.b32.xlu2 %v565_v0, %s1344_s4 }
 0xdaa   :  { %v568_v1 = vpop.permute.xlu2 %567 }
 0xdab   :  { %1167 = vmatmul.msk.f32.vlgmr.msra.gmra.mxu2 %vm189_vm5, %v568_v1 }
 0xdac   :  { %835 = vmatpush.msra.mxu2 %v188_v58 }
 0xdae   :  { %836 = vmatpush.msra.mxu2 %v187_v51 }
 0xdb0   :  { %837 = vmatpush.msra.mxu2 %v186_v59 }
 0xdb2   :  { %838 = vmatpush.msra.mxu2 %v185_v3 }
 0xe2e   :  { %v588_v4 = vpop.f32.mrf.mxu2 }
 0xe2f   :  { %v591_v5 = vadd.f32 %v588_v4, %v111_v2 }
 0xe31   :  { %1252 = vtanh.f32 %v591_v5  ;;  %v1168_v10 = vmul.f32 -1.442695, %v591_v5 }
 0xe33   :  { %1254 = vpow2.f32 %v1168_v10 }
 0xe37   :  { %v1253_v7 = vpop.eup %1252 }
 0xe38   :  { %614 = vrot.lane.b32.xlu0 %v1253_v7, %s1343_s12 }
 0xe39   :  { %v1255_v13 = vpop.eup %1254 }
 0xe3a   :  { %v595_v14 = vadd.f32 1.0, %v1255_v13 }
 0xe3c   :  { %1256 = vrcp.f32 %v595_v14  ;;  %v607_v20 = vand.u32 2147483648, %v595_v14  ;;  %vm601_vm13 = vweird.f32 %v595_v14  ;;  %v605_v52 = vand.u32 2147483647, %v595_v14 }
 0xe3e   :  { %v608_v22 = vor.u32 1.1754944e-38, %v607_v20  ;;  %vm606_vm15 = vcmp.eq.f32.partialorder %v605_v52, 8.507059e+37 }
 0xe42   :  { %v1257_v15 = vpop.eup %1256 }
 0xe43   :  { %v597_v16 = vmul.f32 %v1257_v15, %v595_v14  ;;  %vm602_vm12 = vweird.f32 %v1257_v15 }
 0xe44   :  { %vm603_vm14 = vmor %vm601_vm13, %vm602_vm12 }
 0xe45   :  { %v598_v17 = vsub.f32 1.0, %v597_v16 }
 0xe47   :  { %v599_v18 = vmul.f32 %v1257_v15, %v598_v17 }
 0xe49   :  { %v600_v19 = vadd.f32 %v1257_v15, %v599_v18 }
 0xe4b   :  { %v604_v21 = vsel %vm603_vm14, %v1257_v15, %v600_v19 }
 0xe4c   :  { %v609_v24 = vsel %vm606_vm15, %v608_v22, %v604_v21 }
 0xe4d   :  { %v612_v26 = vmul.f32 %v609_v24, %v559_v49  ;;  %v1595_v49 = vld [vmem:[%s1701_s7] ss:$0 sm:$0xff] }
 0xe4e   :  { %v164_v62 = vadd.f32 %v1595_v49, %v163_v9 }
 0xeaa   :  { %v615_v23 = vpop.permute.xlu0 %614 }
 0xeab   :  { %v617_v25 = vmul.f32 %v615_v23, %v609_v24 }
 0xead   :  { %619 = vrot.lane.b32.xlu1 %v617_v25, %s1344_s4 }
 0xf1f   :  { %v620_v27 = vpop.permute.xlu1 %619 }
 0xf20   :  { %v622_v28 = vadd.f32 %v620_v27, %v612_v26 }
 0xf22   :  { %1258 = vtanh.f32 %v622_v28 }
 0xf28   :  { %v1259_v50 = vpop.eup %1258 }
 0xf29   :  { %625 = vrot.lane.b32.xlu2 %v1259_v50, %s1343_s12 }
 0xf83   :  { %v626_v29 = vpop.permute.xlu2 %625 }
 0xf84   :  { %v628_v30 = vmul.f32 %v626_v29, %v609_v24 }
 0xf86   :  { %630 = vrot.lane.b32.xlu0 %v628_v30, %s1344_s4 }
 0xff8   :  { %v631_v31 = vpop.permute.xlu0 %630 }
 0xff9   :  { %1169 = vmatmul.msk.f32.vlgmr.msra.gmra.mxu3 %vm189_vm5, %v631_v31 }
 0xffa   :  { %898 = vmatpush.msra.mxu3 %v188_v58 }
 0xffc   :  { %899 = vmatpush.msra.mxu3 %v187_v51 }
 0xffe   :  { %900 = vmatpush.msra.mxu3 %v186_v59 }
0x1000   :  { %901 = vmatpush.msra.mxu3 %v185_v3 }
0x107c   :  { %v651_v33 = vpop.f32.mrf.mxu3 }
0x107d   :  { %v654_v34 = vadd.f32 %v651_v33, %v114_v32 }
0x107f   :  { %1260 = vtanh.f32 %v654_v34  ;;  %v1170_v36 = vmul.f32 -1.442695, %v654_v34 }
0x1081   :  { %1262 = vpow2.f32 %v1170_v36 }
0x1085   :  { %v1261_v35 = vpop.eup %1260 }
0x1086   :  { %677 = vrot.lane.b32.xlu1 %v1261_v35, %s1343_s12 }
0x1087   :  { %v1263_v37 = vpop.eup %1262 }
0x1088   :  { %v658_v38 = vadd.f32 1.0, %v1263_v37 }
0x108a   :  { %1264 = vrcp.f32 %v658_v38  ;;  %v670_v44 = vand.u32 2147483648, %v658_v38  ;;  %vm664_vm2 = vweird.f32 %v658_v38  ;;  %v668_v12 = vand.u32 2147483647, %v658_v38 }
0x108c   :  { %v671_v45 = vor.u32 1.1754944e-38, %v670_v44  ;;  %vm669_vm4 = vcmp.eq.f32.partialorder %v668_v12, 8.507059e+37 }
0x1090   :  { %v1265_v39 = vpop.eup %1264 }
0x1091   :  { %v660_v40 = vmul.f32 %v1265_v39, %v658_v38  ;;  %vm665_vm1 = vweird.f32 %v1265_v39 }
0x1092   :  { %vm666_vm3 = vmor %vm664_vm2, %vm665_vm1 }
0x1093   :  { %v661_v41 = vsub.f32 1.0, %v660_v40 }
0x1095   :  { %v662_v42 = vmul.f32 %v1265_v39, %v661_v41 }
0x1097   :  { %v663_v43 = vadd.f32 %v1265_v39, %v662_v42 }
0x1099   :  { %v667_v53 = vsel %vm666_vm3, %v1265_v39, %v663_v43 }
0x109a   :  { %v672_v47 = vsel %vm669_vm4, %v671_v45, %v667_v53 }
0x109b   :  { %v675_v54 = vmul.f32 %v672_v47, %v622_v28  ;;  %v117_v28 = vld [vmem:[%s1695_s1 + $0x8] sm:$0xff] }
0x109c   :  { %1151 = vmatmul.msk.f32.gmra.mxu1 %vm50_vm0, %v117_v28 }
0x10f8   :  { %v678_v46 = vpop.permute.xlu1 %677 }
0x10f9   :  { %v680_v48 = vmul.f32 %v678_v46, %v672_v47 }
0x10fb   :  { %682 = vrot.lane.b32.xlu2 %v680_v48, %s1344_s4 }
0x1119   :  { %v166_v29 = vpop.f32.mrf.mxu1 }
0x111a   :  { %v167_v30 = vadd.f32 %v1595_v49, %v166_v29 }
0x1155   :  { %v683_v55 = vpop.permute.xlu2 %682 }
0x1156   :  { %v1570_v56 = vadd.f32 %v683_v55, %v675_v54 }
0x1158   :  { %1266 = vtanh.f32 %v1570_v56 }
0x115e   :  { %v1267_v57 = vpop.eup %1266 }
0x115f   :  { %688 = vrot.lane.b32.xlu0 %v1267_v57, %s1343_s12 }
0x11d1   :  { %v689_v6 = vpop.permute.xlu0 %688 }
0x11d2   :  { %v691_v60 = vmul.f32 %v689_v6, %v672_v47 }
0x11d4   :  { %693 = vrot.lane.b32.xlu1 %v691_v60, %s1344_s4 }
0x1246   :  { %v694_v61 = vpop.permute.xlu1 %693 }
0x1247   :  { %1171 = vmatmul.msk.f32.vlgmr.msrb.gmra.mxu2 %vm189_vm5, %v694_v61 }
0x1248   :  { %1024 = vmatpush.msrb.mxu2 %v188_v58  ;;  %v118_v58 = vld [vmem:[%s1695_s1 + $0x10] sm:$0xff] }
0x1249   :  { %1152 = vmatmul.msk.f32.gmra.mxu1 %vm50_vm0, %v118_v58 }
0x124a   :  { %1025 = vmatpush.msrb.mxu2 %v187_v51 }
0x124c   :  { %1026 = vmatpush.msrb.mxu2 %v186_v59 }
0x124e   :  { %1027 = vmatpush.msrb.mxu2 %v185_v3 }
0x12c6   :  { %v169_v59 = vpop.f32.mrf.mxu1 }
0x12c7   :  { %v170_v3 = vadd.f32 %v1595_v49, %v169_v59 }
0x12ca   :  { %v714_v63 = vpop.f32.mrf.mxu2 }
0x12cb   :  { %v717_v0 = vadd.f32 %v714_v63, %v164_v62 }
0x12cd   :  { %1268 = vtanh.f32 %v717_v0  ;;  %v1172_v2 = vmul.f32 -1.442695, %v717_v0 }
0x12cf   :  { %1270 = vpow2.f32 %v1172_v2 }
0x12d3   :  { %v1269_v1 = vpop.eup %1268 }
0x12d4   :  { %740 = vrot.lane.b32.xlu2 %v1269_v1, %s1343_s12 }
0x12d5   :  { %v1271_v4 = vpop.eup %1270 }
0x12d6   :  { %v721_v5 = vadd.f32 1.0, %v1271_v4 }
0x12d8   :  { %1272 = vrcp.f32 %v721_v5  ;;  %v733_v16 = vand.u32 2147483648, %v721_v5  ;;  %vm727_vm7 = vweird.f32 %v721_v5  ;;  %v731_v17 = vand.u32 2147483647, %v721_v5 }
0x12da   :  { %v734_v19 = vor.u32 1.1754944e-38, %v733_v16  ;;  %vm732_vm9 = vcmp.eq.f32.partialorder %v731_v17, 8.507059e+37 }
0x12de   :  { %v1273_v7 = vpop.eup %1272 }
0x12df   :  { %v723_v10 = vmul.f32 %v1273_v7, %v721_v5  ;;  %vm728_vm6 = vweird.f32 %v1273_v7 }
0x12e0   :  { %vm729_vm8 = vmor %vm727_vm7, %vm728_vm6 }
0x12e1   :  { %v724_v13 = vsub.f32 1.0, %v723_v10 }
0x12e3   :  { %v725_v14 = vmul.f32 %v1273_v7, %v724_v13 }
0x12e5   :  { %v726_v15 = vadd.f32 %v1273_v7, %v725_v14 }
0x12e7   :  { %v730_v18 = vsel %vm729_vm8, %v1273_v7, %v726_v15 }
0x12e8   :  { %v735_v52 = vsel %vm732_vm9, %v734_v19, %v730_v18 }
0x12e9   :  { %v738_v22 = vmul.f32 %v735_v52, %v1570_v56 }
0x132e   :  { %v741_v20 = vpop.permute.xlu2 %740 }
0x132f   :  { %v743_v21 = vmul.f32 %v741_v20, %v735_v52 }
0x1331   :  { %745 = vrot.lane.b32.xlu0 %v743_v21, %s1344_s4 }
0x13a3   :  { %v746_v23 = vpop.permute.xlu0 %745 }
0x13a4   :  { %v748_v24 = vadd.f32 %v746_v23, %v738_v22  ;;  %v119_v22 = vld [vmem:[%s1695_s1 + $0x18] sm:$0xff] }
0x13a5   :  { %1153 = vmatmul.msk.f32.gmra.mxu1 %vm50_vm0, %v119_v22 }
0x13a6   :  { %1274 = vtanh.f32 %v748_v24 }
0x13ac   :  { %v1275_v25 = vpop.eup %1274 }
0x13ad   :  { %751 = vrot.lane.b32.xlu1 %v1275_v25, %s1343_s12 }
0x141f   :  { %v752_v26 = vpop.permute.xlu1 %751 }
0x1420   :  { %v754_v27 = vmul.f32 %v752_v26, %v735_v52 }
0x1422   :  { %756 = vrot.lane.b32.xlu2 %v754_v27, %s1344_s4 }
0x147c   :  { %v1607_v50 = vpop.permute.xlu2 %756 }
0x147d   :  { %1173 = vmatmul.msk.f32.vlgmr.msrb.gmra.mxu3 %vm189_vm5, %v1607_v50 }
0x1500   :  { %v777_v31 = vpop.f32.mrf.mxu3 }
0x1501   :  { %v780_v32 = vadd.f32 %v777_v31, %v167_v30 }
0x1503   :  { %1276 = vtanh.f32 %v780_v32  ;;  %v1174_v34 = vmul.f32 -1.442695, %v780_v32 }
0x1505   :  { %1278 = vpow2.f32 %v1174_v34 }
0x1509   :  { %v1277_v33 = vpop.eup %1276 }
0x150a   :  { %803 = vrot.lane.b32.xlu0 %v1277_v33, %s1343_s12 }
0x150b   :  { %v1279_v35 = vpop.eup %1278 }
0x150c   :  { %v784_v36 = vadd.f32 1.0, %v1279_v35 }
0x150e   :  { %1280 = vrcp.f32 %v784_v36  ;;  %v796_v42 = vand.u32 2147483648, %v784_v36  ;;  %vm790_vm11 = vweird.f32 %v784_v36  ;;  %v794_v43 = vand.u32 2147483647, %v784_v36 }
0x1510   :  { %v797_v12 = vor.u32 1.1754944e-38, %v796_v42  ;;  %vm795_vm13 = vcmp.eq.f32.partialorder %v794_v43, 8.507059e+37 }
0x1514   :  { %v1281_v37 = vpop.eup %1280 }
0x1515   :  { %v786_v38 = vmul.f32 %v1281_v37, %v784_v36  ;;  %vm791_vm10 = vweird.f32 %v1281_v37 }
0x1516   :  { %vm792_vm12 = vmor %vm790_vm11, %vm791_vm10 }
0x1517   :  { %v787_v39 = vsub.f32 1.0, %v786_v38 }
0x1519   :  { %v788_v40 = vmul.f32 %v1281_v37, %v787_v39 }
0x151b   :  { %v789_v41 = vadd.f32 %v1281_v37, %v788_v40 }
0x151d   :  { %v793_v44 = vsel %vm792_vm12, %v1281_v37, %v789_v41 }
0x151e   :  { %v798_v45 = vsel %vm795_vm13, %v797_v12, %v793_v44 }
0x151f   :  { %v801_v47 = vmul.f32 %v798_v45, %v748_v24  ;;  %v172_v24 = vpop.f32.mrf.mxu1 }
0x1520   :  { %v173_v25 = vadd.f32 %v1595_v49, %v172_v24 }
0x157c   :  { %v804_v53 = vpop.permute.xlu0 %803 }
0x157d   :  { %v806_v46 = vmul.f32 %v804_v53, %v798_v45 }
0x157f   :  { %808 = vrot.lane.b32.xlu1 %v806_v46, %s1344_s4  ;;  %v120_v46 = vld [vmem:[%s1695_s1 + $0x20] sm:$0xff] }
0x1580   :  { %1154 = vmatmul.msk.f32.gmra.mxu1 %vm50_vm0, %v120_v46 }
0x15f1   :  { %v809_v48 = vpop.permute.xlu1 %808 }
0x15f2   :  { %v811_v54 = vadd.f32 %v809_v48, %v801_v47  ;;  %v1073_v47 = vld [vmem:[%s1702_s8 + $0x18] sm:$0xff]  ;;  %v1072_v48 = vld [vmem:[%s1702_s8 + $0x10] sm:$0xff] }
0x15f3   :  { %1191 = vmatpush.msrb.mxu3 %v1073_v47  ;;  %1095 = vmatpush.msra.mxu1 %v1073_v47 }
0x15f4   :  { %1282 = vtanh.f32 %v811_v54 }
0x15f5   :  { %1192 = vmatpush.msrb.mxu3 %v1072_v48  ;;  %1096 = vmatpush.msra.mxu1 %v1072_v48 }
0x15fa   :  { %v1283_v55 = vpop.eup %1282 }
0x15fb   :  { %814 = vrot.lane.b32.xlu2 %v1283_v55, %s1343_s12  ;;  %v1070_v55 = vld [vmem:[%s1702_s8] sm:$0xff] }
0x15fd   :  { %v175_v59 = vpop.f32.mrf.mxu1 }
0x1655   :  { %v815_v56 = vpop.permute.xlu2 %814 }
0x1656   :  { %v817_v57 = vmul.f32 %v815_v56, %v798_v45 }
0x1658   :  { %819 = vrot.lane.b32.xlu0 %v817_v57, %s1344_s4 }
0x16ca   :  { %v1620_v51 = vpop.permute.xlu0 %819 }
0x16cb   :  { %1175 = vmatmul.msk.f32.vlgmr.msra.gmra.mxu2 %vm189_vm5, %v1620_v51 }
0x174e   :  { %v840_v6 = vpop.f32.mrf.mxu2 }
0x174f   :  { %v843_v60 = vadd.f32 %v840_v6, %v170_v3  ;;  %v176_v3 = vadd.f32 %v1595_v49, %v175_v59 }
0x1751   :  { %1284 = vtanh.f32 %v843_v60  ;;  %v1176_v61 = vmul.f32 -1.442695, %v843_v60 }
0x1753   :  { %1286 = vpow2.f32 %v1176_v61 }
0x1757   :  { %v1285_v8 = vpop.eup %1284 }
0x1758   :  { %866 = vrot.lane.b32.xlu1 %v1285_v8, %s1343_s12  ;;  %v1669_v8 = vld [vmem:[%s1703_s9] ss:$0 sm:$0xff]  ;;  %s1345_s9 = smov [#allocation2]  }
0x1759   :  { %v1287_v9 = vpop.eup %1286  ;;  %s1128_s2 = sshll.u32 %s1345_s9, 4  ;;  %s1129_s2 = int_to_ptr.vmem [resolvable:$true] %s1128_s2 }
0x175a   :  { %v847_v62 = vadd.f32 1.0, %v1287_v9 }
0x175c   :  { %1288 = vrcp.f32 %v847_v62  ;;  %v859_v5 = vand.u32 2147483648, %v847_v62  ;;  %vm853_vm15 = vweird.f32 %v847_v62  ;;  %v857_v7 = vand.u32 2147483647, %v847_v62 }
0x175e   :  { %v860_v13 = vor.u32 1.1754944e-38, %v859_v5  ;;  %vm858_vm2 = vcmp.eq.f32.partialorder %v857_v7, 8.507059e+37 }
0x1762   :  { %v1289_v63 = vpop.eup %1288 }
0x1763   :  { %v849_v0 = vmul.f32 %v1289_v63, %v847_v62  ;;  %vm854_vm14 = vweird.f32 %v1289_v63 }
0x1764   :  { %vm855_vm1 = vmor %vm853_vm15, %vm854_vm14 }
0x1765   :  { %v850_v1 = vsub.f32 1.0, %v849_v0 }
0x1767   :  { %v851_v2 = vmul.f32 %v1289_v63, %v850_v1 }
0x1769   :  { %v852_v4 = vadd.f32 %v1289_v63, %v851_v2 }
0x176b   :  { %v856_v10 = vsel %vm855_vm1, %v1289_v63, %v852_v4 }
0x176c   :  { %v861_v15 = vsel %vm858_vm2, %v860_v13, %v856_v10 }
0x176d   :  { %v864_v17 = vmul.f32 %v861_v15, %v811_v54  ;;  %v1071_v54 = vld [vmem:[%s1702_s8 + $0x8] sm:$0xff] }
0x176e   :  { %1193 = vmatpush.msrb.mxu3 %v1071_v54  ;;  %1097 = vmatpush.msra.mxu1 %v1071_v54 }
0x1770   :  { %1194 = vmatpush.msrb.mxu3 %v1070_v55  ;;  %1098 = vmatpush.msra.mxu1 %v1070_v55 }
0x17ca   :  { %v867_v14 = vpop.permute.xlu1 %866 }
0x17cb   :  { %v869_v16 = vmul.f32 %v867_v14, %v861_v15 }
0x17cd   :  { %871 = vrot.lane.b32.xlu2 %v869_v16, %s1344_s4 }
0x1827   :  { %v872_v18 = vpop.permute.xlu2 %871 }
0x1828   :  { %v874_v19 = vadd.f32 %v872_v18, %v864_v17 }
0x182a   :  { %1290 = vtanh.f32 %v874_v19 }
0x1830   :  { %v1291_v20 = vpop.eup %1290 }
0x1831   :  { %877 = vrot.lane.b32.xlu0 %v1291_v20, %s1343_s12 }
0x18a3   :  { %v878_v52 = vpop.permute.xlu0 %877 }
0x18a4   :  { %v880_v21 = vmul.f32 %v878_v52, %v861_v15 }
0x18a6   :  { %882 = vrot.lane.b32.xlu1 %v880_v21, %s1344_s4 }
0x1918   :  { %v883_v23 = vpop.permute.xlu1 %882 }
0x1919   :  { %1177 = vmatmul.msk.f32.vlgmr.msra.gmra.mxu3 %vm189_vm5, %v883_v23 }
0x199c   :  { %v903_v26 = vpop.f32.mrf.mxu3 }
0x199d   :  { %v906_v27 = vadd.f32 %v903_v26, %v173_v25 }
0x199f   :  { %1292 = vtanh.f32 %v906_v27  ;;  %v1178_v29 = vmul.f32 -1.442695, %v906_v27 }
0x19a1   :  { %1294 = vpow2.f32 %v1178_v29 }
0x19a5   :  { %v1293_v28 = vpop.eup %1292 }
0x19a6   :  { %929 = vrot.lane.b32.xlu2 %v1293_v28, %s1343_s12 }
0x19a7   :  { %v1295_v30 = vpop.eup %1294 }
0x19a8   :  { %v910_v31 = vadd.f32 1.0, %v1295_v30  ;;  %v179_v30 = vadd.f32 %v1595_v49, %v1467_v11 }
0x19aa   :  { %1296 = vrcp.f32 %v910_v31  ;;  %v922_v37 = vand.u32 2147483648, %v910_v31  ;;  %vm916_vm4 = vweird.f32 %v910_v31  ;;  %v920_v38 = vand.u32 2147483647, %v910_v31 }
0x19ac   :  { %v923_v40 = vor.u32 1.1754944e-38, %v922_v37  ;;  %vm921_vm7 = vcmp.eq.f32.partialorder %v920_v38, 8.507059e+37 }
0x19b0   :  { %v1297_v32 = vpop.eup %1296 }
0x19b1   :  { %v912_v33 = vmul.f32 %v1297_v32, %v910_v31  ;;  %vm917_vm3 = vweird.f32 %v1297_v32 }
0x19b2   :  { %vm918_vm6 = vmor %vm916_vm4, %vm917_vm3 }
0x19b3   :  { %v913_v34 = vsub.f32 1.0, %v912_v33 }
0x19b5   :  { %v914_v35 = vmul.f32 %v1297_v32, %v913_v34 }
0x19b7   :  { %v915_v36 = vadd.f32 %v1297_v32, %v914_v35 }
0x19b9   :  { %v919_v39 = vsel %vm918_vm6, %v1297_v32, %v915_v36 }
0x19ba   :  { %v924_v42 = vsel %vm921_vm7, %v923_v40, %v919_v39 }
0x19bb   :  { %v927_v44 = vmul.f32 %v924_v42, %v874_v19 }
0x1a00   :  { %v930_v41 = vpop.permute.xlu2 %929 }
0x1a01   :  { %v932_v43 = vmul.f32 %v930_v41, %v924_v42 }
0x1a03   :  { %934 = vrot.lane.b32.xlu0 %v932_v43, %s1344_s4 }
0x1a75   :  { %v935_v12 = vpop.permute.xlu0 %934 }
0x1a76   :  { %v1637_v53 = vadd.f32 %v935_v12, %v927_v44 }
0x1a78   :  { %1298 = vtanh.f32 %v1637_v53 }
0x1a7e   :  { %v1299_v45 = vpop.eup %1298 }
0x1a7f   :  { %940 = vrot.lane.b32.xlu1 %v1299_v45, %s1343_s12 }
0x1af1   :  { %v941_v56 = vpop.permute.xlu1 %940 }
0x1af2   :  { %v943_v57 = vmul.f32 %v941_v56, %v924_v42 }
0x1af4   :  { %945 = vrot.lane.b32.xlu2 %v943_v57, %s1344_s4 }
0x1b4e   :  { %v946_v58 = vpop.permute.xlu2 %945 }
0x1b4f   :  { %1179 = vmatmul.msk.f32.vlgmr.msrb.gmra.mxu1 %vm189_vm5, %v946_v58  ;;  %1186 = vmatmul.msk.f32.vlgmr.msrb.gmra.mxu3 %vm189_vm5, %v946_v58 }
0x1b57   :  { %1183 = vmatmul.msk.f32.vlgmr.msra.gmra.mxu1 %vm189_vm5, %v1607_v50 }
0x1b5f   :  { %1184 = vmatmul.msk.f32.gmra.mxu1 %vm189_vm5, %v1620_v51 }
0x1b67   :  { %1185 = vmatmul.msk.f32.gmra.mxu1 %vm189_vm5, %v883_v23 }
0x1bcc   :  { %v966_v6 = vpop.f32.mrf.mxu1 }
0x1bcd   :  { %v969_v60 = vadd.f32 %v966_v6, %v176_v3 }
0x1bcf   :  { %1300 = vtanh.f32 %v969_v60  ;;  %v1180_v4 = vmul.f32 -1.442695, %v969_v60 }
0x1bd1   :  { %1302 = vpow2.f32 %v1180_v4 }
0x1bd2   :  { %v1109_v61 = vpop.f32.mrf.mxu3 }
0x1bd3   :  { %v1110_v9 = vadd.f32 %v1669_v8, %v1109_v61 }
0x1bd4   :  { %v1100_v50 = vpop.f32.mrf.mxu1 }
0x1bd5   :  { %v1301_v62 = vpop.eup %1300  ;;  %1121 = vst [vmem:[#allocation2 + $0x18] sm:$0xff] %v1110_v9  ;;  %v1101_v51 = vadd.f32 %v1669_v8, %v1100_v50 }
0x1bd6   :  { %992 = vrot.lane.b32.xlu0 %v1301_v62, %s1343_s12 }
0x1bd7   :  { %1118 = vst [vmem:[#allocation2] sm:$0xff] %v1101_v51  ;;  %v1303_v5 = vpop.eup %1302 }
0x1bd8   :  { %v973_v7 = vadd.f32 1.0, %v1303_v5 }
0x1bda   :  { %1304 = vrcp.f32 %v973_v7  ;;  %v985_v17 = vand.u32 2147483648, %v973_v7  ;;  %vm979_vm8 = vweird.f32 %v973_v7  ;;  %v983_v18 = vand.u32 2147483647, %v973_v7 }
0x1bdc   :  { %v1103_v63 = vpop.f32.mrf.mxu1  ;;  %v986_v20 = vor.u32 1.1754944e-38, %v985_v17  ;;  %vm984_vm10 = vcmp.eq.f32.partialorder %v983_v18, 8.507059e+37 }
0x1bdd   :  { %v1104_v0 = vadd.f32 %v1669_v8, %v1103_v63 }
0x1bdf   :  { %1119 = vst [vmem:[#allocation2 + $0x8] sm:$0xff] %v1104_v0 }
0x1be0   :  { %v1305_v10 = vpop.eup %1304 }
0x1be1   :  { %v975_v13 = vmul.f32 %v1305_v10, %v973_v7  ;;  %vm980_vm0 = vweird.f32 %v1305_v10 }
0x1be2   :  { %vm981_vm9 = vmor %vm979_vm8, %vm980_vm0 }
0x1be3   :  { %v976_v14 = vsub.f32 1.0, %v975_v13 }
0x1be4   :  { %v1106_v1 = vpop.f32.mrf.mxu1 }
0x1be5   :  { %v1107_v2 = vadd.f32 %v1669_v8, %v1106_v1  ;;  %v977_v15 = vmul.f32 %v1305_v10, %v976_v14 }
0x1be7   :  { %1120 = vst [vmem:[#allocation2 + $0x10] sm:$0xff] %v1107_v2  ;;  %v978_v16 = vadd.f32 %v1305_v10, %v977_v15 }
0x1be9   :  { %v982_v19 = vsel %vm981_vm9, %v1305_v10, %v978_v16 }
0x1bea   :  { %v987_v21 = vsel %vm984_vm10, %v986_v20, %v982_v19 }
0x1beb   :  { %v990_v23 = vmul.f32 %v987_v21, %v1637_v53 }
0x1c48   :  { %v993_v52 = vpop.permute.xlu0 %992 }
0x1c49   :  { %v995_v22 = vmul.f32 %v993_v52, %v987_v21 }
0x1c4b   :  { %997 = vrot.lane.b32.xlu1 %v995_v22, %s1344_s4 }
0x1cbd   :  { %v998_v24 = vpop.permute.xlu1 %997 }
0x1cbe   :  { %v1000_v25 = vadd.f32 %v998_v24, %v990_v23 }
0x1cc0   :  { %1306 = vtanh.f32 %v1000_v25 }
0x1cc6   :  { %v1307_v26 = vpop.eup %1306 }
0x1cc7   :  { %1003 = vrot.lane.b32.xlu2 %v1307_v26, %s1343_s12 }
0x1d21   :  { %v1004_v27 = vpop.permute.xlu2 %1003 }
0x1d22   :  { %v1006_v28 = vmul.f32 %v1004_v27, %v987_v21 }
0x1d24   :  { %1008 = vrot.lane.b32.xlu0 %v1006_v28, %s1344_s4 }
0x1d96   :  { %v1009_v29 = vpop.permute.xlu0 %1008 }
0x1d97   :  { %1181 = vmatmul.msk.f32.vlgmr.msrb.gmra.mxu2 %vm189_vm5, %v1009_v29  ;;  %1187 = vmatmul.msk.f32.gmra.mxu3 %vm189_vm5, %v1009_v29 }
0x1e1a   :  { %v1029_v31 = vpop.f32.mrf.mxu2  ;;  %v1112_v32 = vpop.f32.mrf.mxu3 }
0x1e1b   :  { %v1032_v33 = vadd.f32 %v1029_v31, %v179_v30  ;;  %v1113_v34 = vadd.f32 %v1669_v8, %v1112_v32 }
0x1e1d   :  { %1308 = vtanh.f32 %v1032_v33  ;;  %1122 = vst [vmem:[#allocation2 + $0x20] sm:$0xff] %v1113_v34  ;;  %v1182_v36 = vmul.f32 -1.442695, %v1032_v33 }
0x1e1f   :  { %1310 = vpow2.f32 %v1182_v36 }
0x1e23   :  { %v1309_v35 = vpop.eup %1308 }
0x1e24   :  { %1055 = vrot.lane.b32.xlu1 %v1309_v35, %s1343_s12 }
0x1e25   :  { %v1311_v37 = vpop.eup %1310 }
0x1e26   :  { %v1036_v38 = vadd.f32 1.0, %v1311_v37 }
0x1e28   :  { %1312 = vrcp.f32 %v1036_v38  ;;  %v1048_v49 = vand.u32 2147483648, %v1036_v38  ;;  %vm1042_vm12 = vweird.f32 %v1036_v38  ;;  %v1046_v43 = vand.u32 2147483647, %v1036_v38 }
0x1e2a   :  { %v1049_v12 = vor.u32 1.1754944e-38, %v1048_v49  ;;  %vm1047_vm14 = vcmp.eq.f32.partialorder %v1046_v43, 8.507059e+37 }
0x1e2e   :  { %v1313_v39 = vpop.eup %1312 }
0x1e2f   :  { %v1038_v40 = vmul.f32 %v1313_v39, %v1036_v38  ;;  %vm1043_vm11 = vweird.f32 %v1313_v39 }
0x1e30   :  { %vm1044_vm13 = vmor %vm1042_vm12, %vm1043_vm11 }
0x1e31   :  { %v1039_v41 = vsub.f32 1.0, %v1038_v40 }
0x1e33   :  { %v1040_v42 = vmul.f32 %v1313_v39, %v1039_v41 }
0x1e35   :  { %v1041_v11 = vadd.f32 %v1313_v39, %v1040_v42 }
0x1e37   :  { %v1045_v44 = vsel %vm1044_vm13, %v1313_v39, %v1041_v11 }
0x1e38   :  { %v1050_v45 = vsel %vm1047_vm14, %v1049_v12, %v1045_v44 }
0x1e39   :  { %v1053_v47 = vmul.f32 %v1050_v45, %v1000_v25 }
0x1e96   :  { %v1056_v53 = vpop.permute.xlu1 %1055 }
0x1e97   :  { %v1058_v46 = vmul.f32 %v1056_v53, %v1050_v45 }
0x1e99   :  { %1060 = vrot.lane.b32.xlu2 %v1058_v46, %s1344_s4 }
0x1ef3   :  { %v1061_v48 = vpop.permute.xlu2 %1060 }
0x1ef4   :  { %v1063_v54 = vadd.f32 %v1061_v48, %v1053_v47 }
0x1ef6   :  { %1314 = vtanh.f32 %v1063_v54 }
0x1efc   :  { %v1315_v55 = vpop.eup %1314 }
0x1efd   :  { %1066 = vrot.lane.b32.xlu0 %v1315_v55, %s1343_s12  ;;  %s1346_s12 = smov 128  }
0x1f6f   :  { %v1067_v56 = vpop.permute.xlu0 %1066 }
0x1f70   :  { %v1069_v57 = vmul.f32 %v1067_v56, %v1050_v45 }
0x1f72   :  { %1079 = vrot.lane.b32.xlu1 %v1069_v57, %s1344_s4 }
0x1fe4   :  { %v1080_v58 = vpop.permute.xlu1 %1079 }
0x1fe5   :  { %1188 = vmatmul.msk.f32.gmra.mxu3 %vm189_vm5, %v1080_v58 }
0x2068   :  { %v1115_v59 = vpop.f32.mrf.mxu3 }
0x2069   :  { %v1116_v3 = vadd.f32 %v1669_v8, %v1115_v59 }
0x206b   :  { %1123 = vst [vmem:[#allocation2 + $0x28] sm:$0xff] %v1116_v3 }
0x206c   :  { %1136 = dma.vmem_to_hbm [thread:$0]  %s1129_s2, 768, %s1131_s30, [#allocation3], %s1346_s12, %s1346_s12, %s1347_s3  }
0x206d   :  { %1340 = dma.done.wait [#allocation3], 768  }
0x206e   :  { %1341 = vsyncadd [#allocation3], 4294966528 }
0x206f   :  { %1141 = vsyncpa [#allocation3], 1 }

</bundles_post_ra>
